<compile_context>
chip_gen: v7x
topology: tpu7x:2x2x1
jax: 0.10.0
libtpu: 0.0.40
codegen_flags: <defaults>
</compile_context>

<pallas_src>
import jax
import jax.numpy as jnp
from jax import lax
from jax.experimental import pallas as pl
from jax.experimental.pallas import tpu as pltpu


# ----------------------------------------------------------------------------
# Fused kernel: one batch element per grid step, everything resident in VMEM.
# ----------------------------------------------------------------------------
def _fcn_kernel(p1_ref, w1_ref, b1_ref, w2_ref, b2_ref, w3_ref, b3_ref,
                wfc_ref, bfc_ref, wsc_ref, wup_ref, bup_ref, o_ref, rm_ref):
    f32 = jnp.float32

    # ---- conv1 + bias + ReLU --------------------------------------------------
    # p1 rows are laid out r*16 + col (col 15 is a zero pad row); w1 has the 32
    # output channels replicated at lane blocks 0:32 / 32:64 / 64:96 so the
    # conv2 folded-K LHS below can be built with lane selects only.
    h1 = jnp.dot(p1_ref[0], w1_ref[...], preferred_element_type=f32)   # (240,128)
    h1 = jnp.maximum(h1 + b1_ref[...], 0.0)

    # ---- conv2: ki folded into K -> ONE matmul; kj folded on the full slab ----
    lane2 = lax.broadcasted_iota(jnp.int32, (208, 128), 1)
    lhs2 = jnp.where(lane2 < 32, h1[0:208],
                     jnp.where(lane2 < 64, h1[16:224], h1[32:240]))    # (208,128)
    part2 = jnp.dot(lhs2, w2_ref[...], preferred_element_type=f32)     # (208,384)
    s2 = (part2[0:206, 0:128] + part2[1:207, 128:256]
          + part2[2:208, 256:384])                                     # (206,128)
    # s2[i*16 + j, :] = conv2 pre-bias output at pixel (i,j), channels
    # replicated 3x along lanes (lanes 96:128 are zero).

    # ---- MaxPool2d(2) BEFORE bias+ReLU ----------------------------------------
    # Row-pair maxima as 6 aligned (16,128) block stores, then column-pair
    # maxima via two stride-2 sublane loads -> pooled map at row-stride 8.
    for pi in range(6):
        r0 = 32 * pi
        rm_ref[pi * 16:pi * 16 + 16, :] = jnp.maximum(
            s2[r0:r0 + 16], s2[r0 + 16:r0 + 32])
    pool_pre = jnp.maximum(rm_ref[pl.ds(0, 48, stride=2), :],
                           rm_ref[pl.ds(1, 48, stride=2), :])          # (48,128)
    hpool = jnp.maximum(pool_pre + b2_ref[...], 0.0)
    # hpool[pi*8 + pj, :] = pooled + ReLU activation at pooled pixel (pi,pj).

    # ---- conv3: same folded-K scheme on the pooled map ------------------------
    lane3 = lax.broadcasted_iota(jnp.int32, (32, 128), 1)
    lhs3 = jnp.where(lane3 < 32, hpool[0:32],
                     jnp.where(lane3 < 64, hpool[8:40], hpool[16:48])) # (32,128)
    part3 = jnp.dot(lhs3, w3_ref[...], preferred_element_type=f32)     # (32,768)
    s3 = (part3[0:30, 0:256] + part3[1:31, 256:512]
          + part3[2:32, 512:768])                                      # (30,256)
    h3 = jnp.maximum(s3 + b3_ref[...], 0.0)
    # h3[i*8 + j, rep*64 + c] = conv3 output at (i,j), replicated 4x on lanes.

    # ---- fc (4x4 conv -> 1x1x256): ki folded into K -> ONE matmul --------------
    lane4 = lax.broadcasted_iota(jnp.int32, (4, 256), 1)
    lhs_fc = jnp.where(lane4 < 64, h3[0:4],
                       jnp.where(lane4 < 128, h3[8:12],
                                 jnp.where(lane4 < 192, h3[16:20], h3[24:28])))
    part_fc = jnp.dot(lhs_fc, wfc_ref[...], preferred_element_type=f32)  # (4,1024)
    fcv = bfc_ref[...]                                                   # (1,256)
    for kj in range(4):
        fcv = fcv + part_fc[kj:kj + 1, kj * 256:(kj + 1) * 256]

    # ---- score (1x1 conv -> 1 channel) as a VPU/XLU lane reduction -------------
    # (score bias is folded into bup at pack time)
    s = jnp.sum(fcv * wsc_ref[...], axis=1, keepdims=True)              # (1,1)

    # ---- upsample (ConvTranspose2d k=64 s=32 on a 1x1 map) + crop --------------
    o_ref[0] = s * wup_ref[...] + bup_ref[...]                          # (1,1024)


# ----------------------------------------------------------------------------
# One-time weight packing (outside the hot path).
# ----------------------------------------------------------------------------
def pack_params(p):
    f32 = jnp.float32

    # conv1: K = ki*9 + kj*3 + c (27 -> pad 32); Cout=32 replicated at lane
    # blocks 0:32 / 32:64 / 64:96 so conv2's folded-K LHS is a pure lane select.
    w1 = jnp.transpose(p["conv1_w"], (2, 3, 1, 0)).reshape(27, 32)
    w1p = jnp.zeros((32, 128), f32)
    b1p = jnp.zeros((1, 128), f32)
    for rep in range(3):
        w1p = w1p.at[:27, rep * 32:(rep + 1) * 32].set(w1)
        b1p = b1p.at[0, rep * 32:(rep + 1) * 32].set(p["conv1_b"])

    # conv2: rows = ki*32 + c (96 -> pad 128); cols = kj*128 + rep*32 + co,
    # with the 32 output channels replicated 3x per kj block (for conv3's LHS).
    w2 = jnp.transpose(p["conv2_w"], (2, 1, 3, 0))              # (ki, c, kj, co)
    w2p = jnp.zeros((3, 32, 3, 4, 32), f32)
    b2p = jnp.zeros((1, 128), f32)
    for rep in range(3):
        w2p = w2p.at[:, :, :, rep, :].set(w2)
        b2p = b2p.at[0, rep * 32:(rep + 1) * 32].set(p["conv2_b"])
    w2p = jnp.pad(w2p.reshape(96, 384), ((0, 32), (0, 0)))      # (128, 384)

    # conv3: rows = ki*32 + c (96 -> pad 128); cols = kj*256 + rep*64 + co,
    # with the 64 output channels replicated 4x per kj block (for fc's LHS).
    w3 = jnp.transpose(p["conv3_w"], (2, 1, 3, 0))              # (ki, c, kj, co)
    w3p = jnp.zeros((3, 32, 3, 4, 64), f32)
    b3p = jnp.zeros((1, 256), f32)
    for rep in range(4):
        w3p = w3p.at[:, :, :, rep, :].set(w3)
        b3p = b3p.at[0, rep * 64:(rep + 1) * 64].set(p["conv3_b"])
    w3p = jnp.pad(w3p.reshape(96, 768), ((0, 32), (0, 0)))      # (128, 768)

    # fc: rows = ki*64 + c (256, no padding); cols = kj*256 + co.  All real data.
    wfp = jnp.transpose(p["fc_w"], (2, 1, 3, 0)).reshape(256, 1024).astype(f32)
    bfp = p["fc_b"].reshape(1, 256).astype(f32)

    wsc = p["score_w"].reshape(1, 256).astype(f32)

    # upsample weight cropped to [19:51, 19:51] and flattened; score bias folded.
    wup = p["up_w"][0, 0, 19:19 + 32, 19:19 + 32].reshape(1, 1024).astype(f32)
    bup = (p["score_b"].reshape(1, 1) * wup + p["up_b"].reshape(1, 1)).astype(f32)

    return dict(w1=w1p, b1=b1p, w2=w2p, b2=b2p, w3=w3p, b3=b3p,
                wfc=wfp, bfc=bfp, wsc=wsc, wup=wup, bup=bup)


# ----------------------------------------------------------------------------
# Forward pass (single pallas_call).
# ----------------------------------------------------------------------------
@jax.jit
def fcn_forward(x_nchw, w):
    N, _, H, W = x_nchw.shape
    assert (H, W) == (32, 32), "packed weights assume 32x32 input (1x1 score map)"
    x = jnp.transpose(x_nchw, (0, 2, 3, 1)).astype(jnp.float32)     # NHWC

    # conv1 im2col (stride 2), laid out with spatial row-stride 16 (col 15 is a
    # zero row) so every in-kernel row slice is sublane-aligned.
    cols = [x[:, ki:ki + 2 * 15:2, kj:kj + 2 * 15:2, :]
            for ki in range(3) for kj in range(3)]
    p1 = jnp.stack(cols, axis=3).reshape(N, 15, 15, 27)
    p1 = jnp.pad(p1, ((0, 0), (0, 0), (0, 1), (0, 5))).reshape(N, 240, 32)

    c2 = lambda n: (0, 0)
    out = pl.pallas_call(
        _fcn_kernel,
        out_shape=jax.ShapeDtypeStruct((N, 1, 1024), jnp.float32),
        grid_spec=pltpu.PrefetchScalarGridSpec(
            num_scalar_prefetch=0,
            grid=(N,),
            in_specs=[
                pl.BlockSpec((1, 240, 32), lambda n: (n, 0, 0)),    # conv1 patches
                pl.BlockSpec((32, 128), c2),                        # w1 (Cout x3)
                pl.BlockSpec((1, 128), c2),                         # b1
                pl.BlockSpec((128, 384), c2),                       # w2 (ki in K)
                pl.BlockSpec((1, 128), c2),                         # b2
                pl.BlockSpec((128, 768), c2),                       # w3 (ki in K)
                pl.BlockSpec((1, 256), c2),                         # b3
                pl.BlockSpec((256, 1024), c2),                      # fc (ki in K)
                pl.BlockSpec((1, 256), c2),                         # fc bias
                pl.BlockSpec((1, 256), c2),                         # score weight
                pl.BlockSpec((1, 1024), c2),                        # up weight (crop)
                pl.BlockSpec((1, 1024), c2),                        # up bias (+score b)
            ],
            out_specs=pl.BlockSpec((1, 1, 1024), lambda n: (n, 0, 0)),
            scratch_shapes=[pltpu.VMEM((96, 128), jnp.float32)],    # row-pair maxima
        ),
        compiler_params=pltpu.CompilerParams(
            dimension_semantics=("parallel",)),
    )(p1, w["w1"], w["b1"], w["w2"], w["b2"], w["w3"], w["b3"],
      w["wfc"], w["bfc"], w["wsc"], w["wup"], w["bup"])
    return out.reshape(N, 1, 32, 32)                                # NCHW


# ----------------------------------------------------------------------------
# Pure-JAX (XLA) reference for correctness checking.
# ----------------------------------------------------------------------------
def fcn_reference(x, p):
    def conv(x, w, b, stride):
        y = lax.conv_general_dilated(
            x, w, (stride, stride), "VALID",
            dimension_numbers=("NCHW", "OIHW", "NCHW"))
        return y + b.reshape(1, -1, 1, 1)

    h = jax.nn.relu(conv(x, p["conv1_w"], p["conv1_b"], 2))
    h = jax.nn.relu(conv(h, p["conv2_w"], p["conv2_b"], 1))
    h = lax.reduce_window(h, -jnp.inf, lax.max,
                          (1, 1, 2, 2), (1, 1, 2, 2), "VALID")
    h = jax.nn.relu(conv(h, p["conv3_w"], p["conv3_b"], 1))
    h = conv(h, p["fc_w"], p["fc_b"], 1)
    h = conv(h, p["score_w"], p["score_b"], 1)                      # (N,1,1,1)
    up = h * p["up_w"][0, 0][None, None, :, :] + p["up_b"].reshape(1, 1, 1, 1)
    Hin, Win = x.shape[2], x.shape[3]
    return up[:, :, 19:19 + Hin, 19:19 + Win]


# ----------------------------------------------------------------------------
# Deterministic parameter init (PyTorch OIHW layout).
# ----------------------------------------------------------------------------
def init_params(key):
    shapes = {
        "conv1_w": (32, 3, 3, 3),   "conv1_b": (32,),
        "conv2_w": (32, 32, 3, 3),  "conv2_b": (32,),
        "conv3_w": (64, 32, 3, 3),  "conv3_b": (64,),
        "fc_w":    (256, 64, 4, 4), "fc_b":    (256,),
        "score_w": (1, 256, 1, 1),  "score_b": (1,),
        "up_w":    (1, 1, 64, 64),  "up_b":    (1,),
    }
    params = {}
    keys = jax.random.split(key, len(shapes))
    for (name, shape), k in zip(sorted(shapes.items()), keys):
        if name.endswith("_w"):
            fan_in = 1
            for d in shape[1:]:
                fan_in *= d
            scale = 1.0 / jnp.sqrt(jnp.float32(fan_in))
            params[name] = jax.random.normal(k, shape, jnp.float32) * scale
        else:
            params[name] = jax.random.normal(k, shape, jnp.float32) * 0.01
    return params


if __name__ == "__main__":
    key = jax.random.PRNGKey(0)
    kp, kx = jax.random.split(key)
    params = init_params(kp)
    packed = pack_params(params)          # one-time weight packing (not per call)
    # Smallest input for which every layer (incl. fc k=4) is valid: 32x32.
    x = jax.random.normal(kx, (2, 3, 32, 32), jnp.float32)

    out = jax.block_until_ready(fcn_forward(x, packed))
    assert out.shape == (2, 1, 32, 32), out.shape

    ref = jax.block_until_ready(fcn_reference(x, params))
    assert jnp.allclose(out, ref, rtol=1e-3, atol=1e-3), (
        float(jnp.max(jnp.abs(out - ref))))

    print("KERNEL_OK")
</pallas_src>

<mosaic_0001>
module attributes {stable_mosaic.version = 11 : i64} {
  func.func @_fcn_kernel(%arg0: i32, %arg1: memref<1x240x32xf32, #tpu.memory_space<vmem>>, %arg2: memref<32x128xf32, #tpu.memory_space<vmem>>, %arg3: memref<1x128xf32, #tpu.memory_space<vmem>>, %arg4: memref<128x384xf32, #tpu.memory_space<vmem>>, %arg5: memref<1x128xf32, #tpu.memory_space<vmem>>, %arg6: memref<128x768xf32, #tpu.memory_space<vmem>>, %arg7: memref<1x256xf32, #tpu.memory_space<vmem>>, %arg8: memref<256x1024xf32, #tpu.memory_space<vmem>>, %arg9: memref<1x256xf32, #tpu.memory_space<vmem>>, %arg10: memref<1x256xf32, #tpu.memory_space<vmem>>, %arg11: memref<1x1024xf32, #tpu.memory_space<vmem>>, %arg12: memref<1x1024xf32, #tpu.memory_space<vmem>>, %arg13: memref<1x1x1024xf32, #tpu.memory_space<vmem>>, %arg14: memref<96x128xf32, #tpu.memory_space<vmem>>) attributes {dimension_semantics = [#tpu.dimension_semantics<parallel>], iteration_bounds = array<i64: 2>, scalar_prefetch = 0 : i64, scratch_operands = 1 : i64, tpu.core_type = #tpu.core_type<tc>, window_params = [{transform_indices = @transform_0, window_bounds = array<i64: 1, 240, 32>}, {pipeline_mode = #tpu.pipeline_mode<synchronous>, transform_indices = @transform_1, window_bounds = array<i64: 32, 128>}, {pipeline_mode = #tpu.pipeline_mode<synchronous>, transform_indices = @transform_2, window_bounds = array<i64: 1, 128>}, {pipeline_mode = #tpu.pipeline_mode<synchronous>, transform_indices = @transform_3, window_bounds = array<i64: 128, 384>}, {pipeline_mode = #tpu.pipeline_mode<synchronous>, transform_indices = @transform_4, window_bounds = array<i64: 1, 128>}, {pipeline_mode = #tpu.pipeline_mode<synchronous>, transform_indices = @transform_5, window_bounds = array<i64: 128, 768>}, {pipeline_mode = #tpu.pipeline_mode<synchronous>, transform_indices = @transform_6, window_bounds = array<i64: 1, 256>}, {pipeline_mode = #tpu.pipeline_mode<synchronous>, transform_indices = @transform_7, window_bounds = array<i64: 256, 1024>}, {pipeline_mode = #tpu.pipeline_mode<synchronous>, transform_indices = @transform_8, window_bounds = array<i64: 1, 256>}, {pipeline_mode = #tpu.pipeline_mode<synchronous>, transform_indices = @transform_9, window_bounds = array<i64: 1, 256>}, {pipeline_mode = #tpu.pipeline_mode<synchronous>, transform_indices = @transform_10, window_bounds = array<i64: 1, 1024>}, {pipeline_mode = #tpu.pipeline_mode<synchronous>, transform_indices = @transform_11, window_bounds = array<i64: 1, 1024>}, {transform_indices = @transform_12, window_bounds = array<i64: 1, 1, 1024>}]} {
    %c0 = arith.constant 0 : index
    %c0_0 = arith.constant 0 : index
    %c0_1 = arith.constant 0 : index
    %0 = vector.load %arg1[%c0, %c0_0, %c0_1] : memref<1x240x32xf32, #tpu.memory_space<vmem>>, vector<1x240x32xf32>
    %1 = vector.shape_cast %0 : vector<1x240x32xf32> to vector<240x32xf32>
    %c0_2 = arith.constant 0 : index
    %c0_3 = arith.constant 0 : index
    %2 = vector.load %arg2[%c0_2, %c0_3] : memref<32x128xf32, #tpu.memory_space<vmem>>, vector<32x128xf32>
    %cst = arith.constant dense<0.000000e+00> : vector<240x128xf32>
    %3 = tpu.matmul %1, %2, %cst {dimension_numbers = #tpu.dot_dimension_numbers<[1], [0], [0], [1], [0, 0, 1, 1], [], []>} : vector<240x32xf32>, vector<32x128xf32>, vector<240x128xf32> -> vector<240x128xf32>
    %c0_4 = arith.constant 0 : index
    %c0_5 = arith.constant 0 : index
    %4 = vector.load %arg3[%c0_4, %c0_5] : memref<1x128xf32, #tpu.memory_space<vmem>>, vector<1x128xf32>
    %5 = vector.broadcast %4 : vector<1x128xf32> to vector<240x128xf32>
    %6 = arith.addf %3, %5 : vector<240x128xf32>
    %cst_6 = arith.constant 0.000000e+00 : f32
    %7 = vector.broadcast %cst_6 : f32 to vector<240x128xf32>
    %8 = arith.maximumf %6, %7 : vector<240x128xf32>
    %9 = tpu.iota {dimensions = array<i32: 1>} : vector<208x128xi32>
    %c32_i32 = arith.constant 32 : i32
    %10 = vector.broadcast %c32_i32 : i32 to vector<208x128xi32>
    %11 = arith.cmpi slt, %9, %10 : vector<208x128xi32>
    %12 = vector.extract_strided_slice %8 {offsets = [0, 0], sizes = [208, 128], strides = [1, 1]} : vector<240x128xf32> to vector<208x128xf32>
    %c64_i32 = arith.constant 64 : i32
    %13 = vector.broadcast %c64_i32 : i32 to vector<208x128xi32>
    %14 = arith.cmpi slt, %9, %13 : vector<208x128xi32>
    %15 = vector.extract_strided_slice %8 {offsets = [16, 0], sizes = [208, 128], strides = [1, 1]} : vector<240x128xf32> to vector<208x128xf32>
    %16 = vector.extract_strided_slice %8 {offsets = [32, 0], sizes = [208, 128], strides = [1, 1]} : vector<240x128xf32> to vector<208x128xf32>
    %17 = arith.select %14, %15, %16 : vector<208x128xi1>, vector<208x128xf32>
    %18 = arith.select %11, %12, %17 : vector<208x128xi1>, vector<208x128xf32>
    %c0_7 = arith.constant 0 : index
    %c0_8 = arith.constant 0 : index
    %19 = vector.load %arg4[%c0_7, %c0_8] : memref<128x384xf32, #tpu.memory_space<vmem>>, vector<128x384xf32>
    %cst_9 = arith.constant dense<0.000000e+00> : vector<208x384xf32>
    %20 = tpu.matmul %18, %19, %cst_9 {dimension_numbers = #tpu.dot_dimension_numbers<[1], [0], [0], [1], [0, 0, 1, 1], [], []>} : vector<208x128xf32>, vector<128x384xf32>, vector<208x384xf32> -> vector<208x384xf32>
    %21 = vector.extract_strided_slice %20 {offsets = [0, 0], sizes = [206, 128], strides = [1, 1]} : vector<208x384xf32> to vector<206x128xf32>
    %22 = vector.extract_strided_slice %20 {offsets = [1, 128], sizes = [206, 128], strides = [1, 1]} : vector<208x384xf32> to vector<206x128xf32>
    %23 = arith.addf %21, %22 : vector<206x128xf32>
    %24 = vector.extract_strided_slice %20 {offsets = [2, 256], sizes = [206, 128], strides = [1, 1]} : vector<208x384xf32> to vector<206x128xf32>
    %25 = arith.addf %23, %24 : vector<206x128xf32>
    %26 = vector.extract_strided_slice %25 {offsets = [0, 0], sizes = [16, 128], strides = [1, 1]} : vector<206x128xf32> to vector<16x128xf32>
    %27 = vector.extract_strided_slice %25 {offsets = [16, 0], sizes = [16, 128], strides = [1, 1]} : vector<206x128xf32> to vector<16x128xf32>
    %28 = arith.maximumf %26, %27 : vector<16x128xf32>
    %c0_10 = arith.constant 0 : index
    %c0_11 = arith.constant 0 : index
    %29 = vector.load %arg14[%c0_10, %c0_11] : memref<96x128xf32, #tpu.memory_space<vmem>>, vector<16x128xf32>
    tpu.vector_store %arg14[%c0_10, %c0_11], %28 {strides = array<i32>} : memref<96x128xf32, #tpu.memory_space<vmem>>, vector<16x128xf32>,
    %30 = vector.extract_strided_slice %25 {offsets = [32, 0], sizes = [16, 128], strides = [1, 1]} : vector<206x128xf32> to vector<16x128xf32>
    %31 = vector.extract_strided_slice %25 {offsets = [48, 0], sizes = [16, 128], strides = [1, 1]} : vector<206x128xf32> to vector<16x128xf32>
    %32 = arith.maximumf %30, %31 : vector<16x128xf32>
    %c16 = arith.constant 16 : index
    %c0_12 = arith.constant 0 : index
    %33 = vector.load %arg14[%c16, %c0_12] : memref<96x128xf32, #tpu.memory_space<vmem>>, vector<16x128xf32>
    tpu.vector_store %arg14[%c16, %c0_12], %32 {strides = array<i32>} : memref<96x128xf32, #tpu.memory_space<vmem>>, vector<16x128xf32>,
    %34 = vector.extract_strided_slice %25 {offsets = [64, 0], sizes = [16, 128], strides = [1, 1]} : vector<206x128xf32> to vector<16x128xf32>
    %35 = vector.extract_strided_slice %25 {offsets = [80, 0], sizes = [16, 128], strides = [1, 1]} : vector<206x128xf32> to vector<16x128xf32>
    %36 = arith.maximumf %34, %35 : vector<16x128xf32>
    %c32 = arith.constant 32 : index
    %c0_13 = arith.constant 0 : index
    %37 = vector.load %arg14[%c32, %c0_13] : memref<96x128xf32, #tpu.memory_space<vmem>>, vector<16x128xf32>
    tpu.vector_store %arg14[%c32, %c0_13], %36 {strides = array<i32>} : memref<96x128xf32, #tpu.memory_space<vmem>>, vector<16x128xf32>,
    %38 = vector.extract_strided_slice %25 {offsets = [96, 0], sizes = [16, 128], strides = [1, 1]} : vector<206x128xf32> to vector<16x128xf32>
    %39 = vector.extract_strided_slice %25 {offsets = [112, 0], sizes = [16, 128], strides = [1, 1]} : vector<206x128xf32> to vector<16x128xf32>
    %40 = arith.maximumf %38, %39 : vector<16x128xf32>
    %c48 = arith.constant 48 : index
    %c0_14 = arith.constant 0 : index
    %41 = vector.load %arg14[%c48, %c0_14] : memref<96x128xf32, #tpu.memory_space<vmem>>, vector<16x128xf32>
    tpu.vector_store %arg14[%c48, %c0_14], %40 {strides = array<i32>} : memref<96x128xf32, #tpu.memory_space<vmem>>, vector<16x128xf32>,
    %42 = vector.extract_strided_slice %25 {offsets = [128, 0], sizes = [16, 128], strides = [1, 1]} : vector<206x128xf32> to vector<16x128xf32>
    %43 = vector.extract_strided_slice %25 {offsets = [144, 0], sizes = [16, 128], strides = [1, 1]} : vector<206x128xf32> to vector<16x128xf32>
    %44 = arith.maximumf %42, %43 : vector<16x128xf32>
    %c64 = arith.constant 64 : index
    %c0_15 = arith.constant 0 : index
    %45 = vector.load %arg14[%c64, %c0_15] : memref<96x128xf32, #tpu.memory_space<vmem>>, vector<16x128xf32>
    tpu.vector_store %arg14[%c64, %c0_15], %44 {strides = array<i32>} : memref<96x128xf32, #tpu.memory_space<vmem>>, vector<16x128xf32>,
    %46 = vector.extract_strided_slice %25 {offsets = [160, 0], sizes = [16, 128], strides = [1, 1]} : vector<206x128xf32> to vector<16x128xf32>
    %47 = vector.extract_strided_slice %25 {offsets = [176, 0], sizes = [16, 128], strides = [1, 1]} : vector<206x128xf32> to vector<16x128xf32>
    %48 = arith.maximumf %46, %47 : vector<16x128xf32>
    %c80 = arith.constant 80 : index
    %c0_16 = arith.constant 0 : index
    %49 = vector.load %arg14[%c80, %c0_16] : memref<96x128xf32, #tpu.memory_space<vmem>>, vector<16x128xf32>
    tpu.vector_store %arg14[%c80, %c0_16], %48 {strides = array<i32>} : memref<96x128xf32, #tpu.memory_space<vmem>>, vector<16x128xf32>,
    %c0_17 = arith.constant 0 : index
    %c0_18 = arith.constant 0 : index
    %50 = tpu.strided_load %arg14[%c0_17, %c0_18] {strides = array<i32: 2, 1>} : memref<96x128xf32, #tpu.memory_space<vmem>>, vector<48x128xf32>
    %c1 = arith.constant 1 : index
    %c0_19 = arith.constant 0 : index
    %51 = tpu.strided_load %arg14[%c1, %c0_19] {strides = array<i32: 2, 1>} : memref<96x128xf32, #tpu.memory_space<vmem>>, vector<48x128xf32>
    %52 = arith.maximumf %50, %51 : vector<48x128xf32>
    %c0_20 = arith.constant 0 : index
    %c0_21 = arith.constant 0 : index
    %53 = vector.load %arg5[%c0_20, %c0_21] : memref<1x128xf32, #tpu.memory_space<vmem>>, vector<1x128xf32>
    %54 = vector.broadcast %53 : vector<1x128xf32> to vector<48x128xf32>
    %55 = arith.addf %52, %54 : vector<48x128xf32>
    %cst_22 = arith.constant 0.000000e+00 : f32
    %56 = vector.broadcast %cst_22 : f32 to vector<48x128xf32>
    %57 = arith.maximumf %55, %56 : vector<48x128xf32>
    %58 = tpu.iota {dimensions = array<i32: 1>} : vector<32x128xi32>
    %c32_i32_23 = arith.constant 32 : i32
    %59 = vector.broadcast %c32_i32_23 : i32 to vector<32x128xi32>
    %60 = arith.cmpi slt, %58, %59 : vector<32x128xi32>
    %61 = vector.extract_strided_slice %57 {offsets = [0, 0], sizes = [32, 128], strides = [1, 1]} : vector<48x128xf32> to vector<32x128xf32>
    %c64_i32_24 = arith.constant 64 : i32
    %62 = vector.broadcast %c64_i32_24 : i32 to vector<32x128xi32>
    %63 = arith.cmpi slt, %58, %62 : vector<32x128xi32>
    %64 = vector.extract_strided_slice %57 {offsets = [8, 0], sizes = [32, 128], strides = [1, 1]} : vector<48x128xf32> to vector<32x128xf32>
    %65 = vector.extract_strided_slice %57 {offsets = [16, 0], sizes = [32, 128], strides = [1, 1]} : vector<48x128xf32> to vector<32x128xf32>
    %66 = arith.select %63, %64, %65 : vector<32x128xi1>, vector<32x128xf32>
    %67 = arith.select %60, %61, %66 : vector<32x128xi1>, vector<32x128xf32>
    %c0_25 = arith.constant 0 : index
    %c0_26 = arith.constant 0 : index
    %68 = vector.load %arg6[%c0_25, %c0_26] : memref<128x768xf32, #tpu.memory_space<vmem>>, vector<128x768xf32>
    %cst_27 = arith.constant dense<0.000000e+00> : vector<32x768xf32>
    %69 = tpu.matmul %67, %68, %cst_27 {dimension_numbers = #tpu.dot_dimension_numbers<[1], [0], [0], [1], [0, 0, 1, 1], [], []>} : vector<32x128xf32>, vector<128x768xf32>, vector<32x768xf32> -> vector<32x768xf32>
    %70 = vector.extract_strided_slice %69 {offsets = [0, 0], sizes = [30, 256], strides = [1, 1]} : vector<32x768xf32> to vector<30x256xf32>
    %71 = vector.extract_strided_slice %69 {offsets = [1, 256], sizes = [30, 256], strides = [1, 1]} : vector<32x768xf32> to vector<30x256xf32>
    %72 = arith.addf %70, %71 : vector<30x256xf32>
    %73 = vector.extract_strided_slice %69 {offsets = [2, 512], sizes = [30, 256], strides = [1, 1]} : vector<32x768xf32> to vector<30x256xf32>
    %74 = arith.addf %72, %73 : vector<30x256xf32>
    %c0_28 = arith.constant 0 : index
    %c0_29 = arith.constant 0 : index
    %75 = vector.load %arg7[%c0_28, %c0_29] : memref<1x256xf32, #tpu.memory_space<vmem>>, vector<1x256xf32>
    %76 = vector.broadcast %75 : vector<1x256xf32> to vector<30x256xf32>
    %77 = arith.addf %74, %76 : vector<30x256xf32>
    %cst_30 = arith.constant 0.000000e+00 : f32
    %78 = vector.broadcast %cst_30 : f32 to vector<30x256xf32>
    %79 = arith.maximumf %77, %78 : vector<30x256xf32>
    %80 = tpu.iota {dimensions = array<i32: 1>} : vector<4x256xi32>
    %c64_i32_31 = arith.constant 64 : i32
    %81 = vector.broadcast %c64_i32_31 : i32 to vector<4x256xi32>
    %82 = arith.cmpi slt, %80, %81 : vector<4x256xi32>
    %83 = vector.extract_strided_slice %79 {offsets = [0, 0], sizes = [4, 256], strides = [1, 1]} : vector<30x256xf32> to vector<4x256xf32>
    %c128_i32 = arith.constant 128 : i32
    %84 = vector.broadcast %c128_i32 : i32 to vector<4x256xi32>
    %85 = arith.cmpi slt, %80, %84 : vector<4x256xi32>
    %86 = vector.extract_strided_slice %79 {offsets = [8, 0], sizes = [4, 256], strides = [1, 1]} : vector<30x256xf32> to vector<4x256xf32>
    %c192_i32 = arith.constant 192 : i32
    %87 = vector.broadcast %c192_i32 : i32 to vector<4x256xi32>
    %88 = arith.cmpi slt, %80, %87 : vector<4x256xi32>
    %89 = vector.extract_strided_slice %79 {offsets = [16, 0], sizes = [4, 256], strides = [1, 1]} : vector<30x256xf32> to vector<4x256xf32>
    %90 = vector.extract_strided_slice %79 {offsets = [24, 0], sizes = [4, 256], strides = [1, 1]} : vector<30x256xf32> to vector<4x256xf32>
    %91 = arith.select %88, %89, %90 : vector<4x256xi1>, vector<4x256xf32>
    %92 = arith.select %85, %86, %91 : vector<4x256xi1>, vector<4x256xf32>
    %93 = arith.select %82, %83, %92 : vector<4x256xi1>, vector<4x256xf32>
    %c0_32 = arith.constant 0 : index
    %c0_33 = arith.constant 0 : index
    %94 = vector.load %arg8[%c0_32, %c0_33] : memref<256x1024xf32, #tpu.memory_space<vmem>>, vector<256x1024xf32>
    %cst_34 = arith.constant dense<0.000000e+00> : vector<4x1024xf32>
    %95 = tpu.matmul %93, %94, %cst_34 {dimension_numbers = #tpu.dot_dimension_numbers<[1], [0], [0], [1], [0, 0, 1, 1], [], []>} : vector<4x256xf32>, vector<256x1024xf32>, vector<4x1024xf32> -> vector<4x1024xf32>
    %c0_35 = arith.constant 0 : index
    %c0_36 = arith.constant 0 : index
    %96 = vector.load %arg9[%c0_35, %c0_36] : memref<1x256xf32, #tpu.memory_space<vmem>>, vector<1x256xf32>
    %97 = vector.extract_strided_slice %95 {offsets = [0, 0], sizes = [1, 256], strides = [1, 1]} : vector<4x1024xf32> to vector<1x256xf32>
    %98 = arith.addf %96, %97 : vector<1x256xf32>
    %99 = vector.extract_strided_slice %95 {offsets = [1, 256], sizes = [1, 256], strides = [1, 1]} : vector<4x1024xf32> to vector<1x256xf32>
    %100 = arith.addf %98, %99 : vector<1x256xf32>
    %101 = vector.extract_strided_slice %95 {offsets = [2, 512], sizes = [1, 256], strides = [1, 1]} : vector<4x1024xf32> to vector<1x256xf32>
    %102 = arith.addf %100, %101 : vector<1x256xf32>
    %103 = vector.extract_strided_slice %95 {offsets = [3, 768], sizes = [1, 256], strides = [1, 1]} : vector<4x1024xf32> to vector<1x256xf32>
    %104 = arith.addf %102, %103 : vector<1x256xf32>
    %c0_37 = arith.constant 0 : index
    %c0_38 = arith.constant 0 : index
    %105 = vector.load %arg10[%c0_37, %c0_38] : memref<1x256xf32, #tpu.memory_space<vmem>>, vector<1x256xf32>
    %106 = arith.mulf %104, %105 : vector<1x256xf32>
    %cst_39 = arith.constant dense<0.000000e+00> : vector<1xf32>
    %107 = vector.multi_reduction <add>, %106, %cst_39 [1] : vector<1x256xf32> to vector<1xf32>
    %108 = vector.shape_cast %107 : vector<1xf32> to vector<1x1xf32>
    %c0_40 = arith.constant 0 : index
    %c0_41 = arith.constant 0 : index
    %109 = vector.load %arg11[%c0_40, %c0_41] : memref<1x1024xf32, #tpu.memory_space<vmem>>, vector<1x1024xf32>
    %110 = vector.broadcast %108 : vector<1x1xf32> to vector<1x1024xf32>
    %111 = arith.mulf %110, %109 : vector<1x1024xf32>
    %c0_42 = arith.constant 0 : index
    %c0_43 = arith.constant 0 : index
    %112 = vector.load %arg12[%c0_42, %c0_43] : memref<1x1024xf32, #tpu.memory_space<vmem>>, vector<1x1024xf32>
    %113 = arith.addf %111, %112 : vector<1x1024xf32>
    %c0_44 = arith.constant 0 : index
    %c0_45 = arith.constant 0 : index
    %c0_46 = arith.constant 0 : index
    %114 = vector.load %arg13[%c0_44, %c0_45, %c0_46] : memref<1x1x1024xf32, #tpu.memory_space<vmem>>, vector<1x1x1024xf32>
    %115 = vector.shape_cast %114 : vector<1x1x1024xf32> to vector<1x1024xf32>
    %116 = vector.shape_cast %113 : vector<1x1024xf32> to vector<1x1x1024xf32>
    tpu.vector_store %arg13[%c0_44, %c0_45, %c0_46], %116 {strides = array<i32>} : memref<1x1x1024xf32, #tpu.memory_space<vmem>>, vector<1x1x1024xf32>,
    return
  }
  func.func @transform_0(%arg0: i32) -> (i32, i32, i32) {
    %c0_i32 = arith.constant 0 : i32
    %c0_i32_0 = arith.constant 0 : i32
    %c0_i32_1 = arith.constant 0 : i32
    return %arg0, %c0_i32, %c0_i32_0 : i32, i32, i32
  }
  func.func @transform_1(%arg0: i32) -> (i32, i32) {
    %c0_i32 = arith.constant 0 : i32
    %c0_i32_0 = arith.constant 0 : i32
    %c0_i32_1 = arith.constant 0 : i32
    return %c0_i32, %c0_i32_0 : i32, i32
  }
  func.func @transform_2(%arg0: i32) -> (i32, i32) {
    %c0_i32 = arith.constant 0 : i32
    %c0_i32_0 = arith.constant 0 : i32
    %c0_i32_1 = arith.constant 0 : i32
    return %c0_i32, %c0_i32_0 : i32, i32
  }
  func.func @transform_3(%arg0: i32) -> (i32, i32) {
    %c0_i32 = arith.constant 0 : i32
    %c0_i32_0 = arith.constant 0 : i32
    %c0_i32_1 = arith.constant 0 : i32
    return %c0_i32, %c0_i32_0 : i32, i32
  }
  func.func @transform_4(%arg0: i32) -> (i32, i32) {
    %c0_i32 = arith.constant 0 : i32
    %c0_i32_0 = arith.constant 0 : i32
    %c0_i32_1 = arith.constant 0 : i32
    return %c0_i32, %c0_i32_0 : i32, i32
  }
  func.func @transform_5(%arg0: i32) -> (i32, i32) {
    %c0_i32 = arith.constant 0 : i32
    %c0_i32_0 = arith.constant 0 : i32
    %c0_i32_1 = arith.constant 0 : i32
    return %c0_i32, %c0_i32_0 : i32, i32
  }
  func.func @transform_6(%arg0: i32) -> (i32, i32) {
    %c0_i32 = arith.constant 0 : i32
    %c0_i32_0 = arith.constant 0 : i32
    %c0_i32_1 = arith.constant 0 : i32
    return %c0_i32, %c0_i32_0 : i32, i32
  }
  func.func @transform_7(%arg0: i32) -> (i32, i32) {
    %c0_i32 = arith.constant 0 : i32
    %c0_i32_0 = arith.constant 0 : i32
    %c0_i32_1 = arith.constant 0 : i32
    return %c0_i32, %c0_i32_0 : i32, i32
  }
  func.func @transform_8(%arg0: i32) -> (i32, i32) {
    %c0_i32 = arith.constant 0 : i32
    %c0_i32_0 = arith.constant 0 : i32
    %c0_i32_1 = arith.constant 0 : i32
    return %c0_i32, %c0_i32_0 : i32, i32
  }
  func.func @transform_9(%arg0: i32) -> (i32, i32) {
    %c0_i32 = arith.constant 0 : i32
    %c0_i32_0 = arith.constant 0 : i32
    %c0_i32_1 = arith.constant 0 : i32
    return %c0_i32, %c0_i32_0 : i32, i32
  }
  func.func @transform_10(%arg0: i32) -> (i32, i32) {
    %c0_i32 = arith.constant 0 : i32
    %c0_i32_0 = arith.constant 0 : i32
    %c0_i32_1 = arith.constant 0 : i32
    return %c0_i32, %c0_i32_0 : i32, i32
  }
  func.func @transform_11(%arg0: i32) -> (i32, i32) {
    %c0_i32 = arith.constant 0 : i32
    %c0_i32_0 = arith.constant 0 : i32
    %c0_i32_1 = arith.constant 0 : i32
    return %c0_i32, %c0_i32_0 : i32, i32
  }
  func.func @transform_12(%arg0: i32) -> (i32, i32, i32) {
    %c0_i32 = arith.constant 0 : i32
    %c0_i32_0 = arith.constant 0 : i32
    %c0_i32_1 = arith.constant 0 : i32
    return %arg0, %c0_i32, %c0_i32_0 : i32, i32, i32
  }
}

</mosaic_0001>

<bundles_post_ra>
// kernel: fcn_forward.1
= control target key start
LH: loop header
LB: loop body
LE: loop exit
PB: predicated region body
PF: predicated region fallthrough
CT: control target
= control target key end

     0   :  { %s3717_s21 = smov 0   ;;  %s5536_s0 = inlined_call_operand.vmem [shape: f32[2,240,32], index: 0, kind: input, shape index: {}]   ;;  %s5537_s1 = inlined_call_operand.vmem [shape: f32[32,128], index: 1, kind: input, shape index: {}]   ;;  %s5538_s2 = inlined_call_operand.vmem [shape: f32[1,128], index: 2, kind: input, shape index: {}]   ;;  %s5539_s3 = inlined_call_operand.vmem [shape: f32[128,384], index: 3, kind: input, shape index: {}]   ;;  %s5540_s4 = inlined_call_operand.vmem [shape: f32[1,128], index: 4, kind: input, shape index: {}]   ;;  %s5541_s5 = inlined_call_operand.vmem [shape: f32[128,768], index: 5, kind: input, shape index: {}]   ;;  %s5542_s6 = inlined_call_operand.vmem [shape: f32[1,256], index: 6, kind: input, shape index: {}]   ;;  %s5543_s7 = inlined_call_operand.vmem [shape: f32[256,1024], index: 7, kind: input, shape index: {}]   ;;  %s5544_s8 = inlined_call_operand.vmem [shape: f32[1,256], index: 8, kind: input, shape index: {}]   ;;  %s5545_s9 = inlined_call_operand.vmem [shape: f32[1,256], index: 9, kind: input, shape index: {}]   ;;  %s5546_s10 = inlined_call_operand.vmem [shape: f32[1,1024], index: 10, kind: input, shape index: {}]   ;;  %s5547_s11 = inlined_call_operand.vmem [shape: f32[1,1024], index: 11, kind: input, shape index: {}]   ;;  %s5548_s12 = inlined_call_operand.vmem [shape: f32[2,1,1024], index: 12, kind: output, shape index: {}]  }
   0x1 LB: > { %s2962_s22 = sadd.s32 4294967295, %s3648_s21   ;;  %p2966_p0 = scmp.ge.s32.totalorder %s3648_s21, 1  ;;  %s3648_s21 = sphi %s3717_s21, %s22_s21  }
   0x2   : > { %p362_p1 = scmp.lt.s32.totalorder %s3648_s21, 3 }
   0x4   : > { %p363_p2 = pnand %p2966_p0, %p362_p1 }
   0x5   : > { %v442_v0 = vld [vmem:[%s5537_s1] sm:$0xff] (!%p363_p2)  ;;  %v443_v1 = vld [vmem:[%s5537_s1 + $0x8] sm:$0xff] (!%p363_p2)  ;;  %v444_v2 = vld [vmem:[%s5537_s1 + $0x10] sm:$0xff] (!%p363_p2)  ;;  %p403_p3 = scmp.lt.s32.totalorder (!%p363_p2), %s2962_s22, 1  ;;  %vm453_vm0 = vcmask (!%p363_p2), 261120   ;;  %vm1453_vm3 = vcmask (!%p363_p2), 1045504  }
   0x6   : > { %366 = sbr.rel (%p363_p2) target bundleno = 1274 (0x4fa), region = 68  ;;  %v3203_v3 = vpack.c.bf16 (!%p363_p2), %v443_v1, %v442_v0  ;;  %v445_v4 = vld [vmem:[%s5537_s1 + $0x18] sm:$0xff] (!%p363_p2)  ;;  %v847_v6 = vld [vmem:[%s5539_s3 + $0x10] sm:$0xff] (!%p363_p2)  ;;  %v846_v7 = vld [vmem:[%s5539_s3 + $0x8] sm:$0xff] (!%p363_p2)  ;;  %vm1330_vm4 = vcmask (!%p363_p2), 1046528   ;;  %vm2744_vm6 = vcmask (!%p363_p2), 1040384  }
   0x7   : > { %v3207_v5 = vpack.c.bf16 (!%p363_p2), %v445_v4, %v444_v2  ;;  %v849_v8 = vld [vmem:[%s5539_s3 + $0x20] sm:$0xff] (!%p363_p2)  ;;  %v850_v9 = vld [vmem:[%s5539_s3 + $0x28] sm:$0xff] (!%p363_p2)  ;;  %v856_v13 = vld [vmem:[%s5539_s3 + $0x58] sm:$0xff] (!%p363_p2) }
   0x8   : > { %3204 = vmatprep.subr.bf16.mxu0 (!%p363_p2), %v3203_v3  ;;  %3627 = vmatprep.subr.bf16.mxu1 (!%p363_p2), %v3203_v3  ;;  %v3243_v10 = vpack.c.bf16 (!%p363_p2), %v850_v9, %v847_v6  ;;  %v3211_v11 = vpack.c.bf16 (!%p363_p2), %v849_v8, %v846_v7  ;;  %v853_v12 = vld [vmem:[%s5539_s3 + $0x40] sm:$0xff] (!%p363_p2)  ;;  %v848_v18 = vld [vmem:[%s5539_s3 + $0x18] sm:$0xff] (!%p363_p2)  ;;  %v855_v21 = vld [vmem:[%s5539_s3 + $0x50] sm:$0xff] (!%p363_p2) }
   0x9   : > { %3206 = vmatpush3.bf16.msra.mxu0 (!%p363_p2), %v3203_v3  ;;  %3629 = vmatpush3.bf16.msra.mxu1 (!%p363_p2), %v3203_v3  ;;  %v845_v17 = vld [vmem:[%s5539_s3] sm:$0xff] (!%p363_p2)  ;;  %v3247_v19 = vpack.c.bf16 (!%p363_p2), %v856_v13, %v853_v12  ;;  %v852_v20 = vld [vmem:[%s5539_s3 + $0x38] sm:$0xff] (!%p363_p2)  ;;  %v851_v22 = vld [vmem:[%s5539_s3 + $0x30] sm:$0xff] (!%p363_p2) }
   0xa   : > { %3208 = vmatprep.subr.bf16.mxu0 (!%p363_p2), %v3207_v5  ;;  %3628 = vmatprep.subr.bf16.mxu1 (!%p363_p2), %v3207_v5  ;;  %v3213_v26 = vpack.c.bf16 (!%p363_p2), %v848_v18, %v845_v17  ;;  %v3215_v29 = vpack.c.bf16 (!%p363_p2), %v855_v21, %v852_v20  ;;  %v854_v30 = vld [vmem:[%s5539_s3 + $0x48] sm:$0xff] (!%p363_p2)  ;;  %v861_v32 = vld [vmem:[%s5539_s3 + $0x80] sm:$0xff] (!%p363_p2)  ;;  %v859_v34 = vld [vmem:[%s5539_s3 + $0x70] sm:$0xff] (!%p363_p2) }
   0xb   : > { %v858_v31 = vld [vmem:[%s5539_s3 + $0x68] sm:$0xff] (!%p363_p2)  ;;  %v3217_v37 = vpack.c.bf16 (!%p363_p2), %v854_v30, %v851_v22  ;;  %v857_v38 = vld [vmem:[%s5539_s3 + $0x60] sm:$0xff] (!%p363_p2)  ;;  %v860_v41 = vld [vmem:[%s5539_s3 + $0x78] sm:$0xff] (!%p363_p2) }
   0xc   : > { %v3219_v40 = vpack.c.bf16 (!%p363_p2), %v861_v32, %v858_v31  ;;  %v862_v42 = vld [vmem:[%s5539_s3 + $0x88] sm:$0xff] (!%p363_p2)  ;;  %v864_v44 = vld [vmem:[%s5539_s3 + $0x98] sm:$0xff] (!%p363_p2)  ;;  %v867_v45 = vld [vmem:[%s5539_s3 + $0xb0] sm:$0xff] (!%p363_p2)  ;;  %v3221_v51 = vpack.c.bf16 (!%p363_p2), %v860_v41, %v857_v38 }
   0xd   : > { %s5550_s22 = smov (!%p403_p3, %s2962_s22), 1  ;;  %3210 = vmatpush3.bf16.msra.mxu0 %v3207_v5  ;;  %3630 = vmatpush3.bf16.msra.mxu1 %v3207_v5  ;;  %v3251_v43 = vpack.c.bf16 %v862_v42, %v859_v34  ;;  %v865_v46 = vld [vmem:[%s5539_s3 + $0xa0] sm:$0xff]  ;;  %v868_v48 = vld [vmem:[%s5539_s3 + $0xb8] sm:$0xff]  ;;  %v3223_v53 = vpack.c.bf16 %v867_v45, %v864_v44  ;;  %v863_v54 = vld [vmem:[%s5539_s3 + $0x90] sm:$0xff]  ;;  %v3650_v44 = vmov 0.0  }
   0xe   : > { %s3631_s23 = smul.u32 240, %s5550_s22  ;;  %3244 = vmatprep.subr.bf16.mxu0 %v3243_v10  ;;  %3212 = vmatprep.subr.bf16.mxu1 %v3211_v11  ;;  %v866_v55 = vld [vmem:[%s5539_s3 + $0xa8] sm:$0xff]  ;;  %v3255_v56 = vpack.c.bf16 %v868_v48, %v865_v46  ;;  %v873_v9 = vld [vmem:[%s5539_s3 + $0xe0] sm:$0xff]  ;;  %v872_v12 = vld [vmem:[%s5539_s3 + $0xd8] sm:$0xff]  ;;  %v789_v46 = vlaneseq  ;;  %s2968_s17 = sshll.u32 %s5550_s22, 3 }
   0xf   : > { %v3225_v60 = vpack.c.bf16 %v866_v55, %v863_v54  ;;  %v870_v8 = vld [vmem:[%s5539_s3 + $0xc8] sm:$0xff]  ;;  %v869_v11 = vld [vmem:[%s5539_s3 + $0xc0] sm:$0xff]  ;;  %v871_v13 = vld [vmem:[%s5539_s3 + $0xd0] sm:$0xff]  ;;  %s411_s20 = scalar_lea.vmem %s5548_s12, %s2968_s17 }
  0x10   : > { %s3755_s26 = scalar_lea.vmem %s5536_s0, %s3631_s23  ;;  %v876_v17 = vld [vmem:[%s5539_s3 + $0xf8] sm:$0xff]  ;;  %v879_v18 = vld [vmem:[%s5539_s3 + $0x110] sm:$0xff]  ;;  %v878_v21 = vld [vmem:[%s5539_s3 + $0x108] sm:$0xff] }
  0x11   : > { %v412_v14 = vld [vmem:[%s3755_s26] sm:$0xff]  ;;  %v413_v15 = vld [vmem:[%s3755_s26 + $0x8] sm:$0xff]  ;;  %v414_v16 = vld [vmem:[%s3755_s26 + $0x10] sm:$0xff] }
  0x12   : > { %3087 = vmatprep.mubr.msk.f32.mxu0 %vm453_vm0, %v412_v14  ;;  %v415_v23 = vld [vmem:[%s3755_s26 + $0x18] sm:$0xff]  ;;  %v428_v24 = vld [vmem:[%s3755_s26 + $0x80] sm:$0xff]  ;;  %v429_v25 = vld [vmem:[%s3755_s26 + $0x88] sm:$0xff]  ;;  %v3229_v14 = vpack.c.bf16 %v872_v12, %v869_v11 }
  0x13   : > { %3088 = vmatmul.mubr.msk.f32.vlgmr.msra.gmra.mrb[0].mxu0 %vm453_vm0, %v413_v15  ;;  %v416_v27 = vld [vmem:[%s3755_s26 + $0x20] sm:$0xff]  ;;  %3111 = vmatprep.mubr.msk.f32.mxu1 %vm453_vm0, %v428_v24  ;;  %v430_v28 = vld [vmem:[%s3755_s26 + $0x90] sm:$0xff]  ;;  %v431_v33 = vld [vmem:[%s3755_s26 + $0x98] sm:$0xff] }
  0x14   : > { %3090 = vmatprep.mubr.msk.f32.mxu0 %vm453_vm0, %v414_v16  ;;  %3246 = vmatpush3.bf16.msra.mxu0 %v3243_v10  ;;  %v417_v35 = vld [vmem:[%s3755_s26 + $0x28] sm:$0xff]  ;;  %v432_v36 = vld [vmem:[%s3755_s26 + $0xa0] sm:$0xff]  ;;  %v418_v39 = vld [vmem:[%s3755_s26 + $0x30] sm:$0xff]  ;;  %v3227_v10 = vpack.c.bf16 %v873_v9, %v870_v8 }
  0x15   : > { %3248 = vmatprep.subr.bf16.mxu0 %v3247_v19  ;;  %3112 = vmatmul.mubr.msk.f32.vlgmr.msra.gmra.mrb[0].mxu1 %vm453_vm0, %v429_v25  ;;  %v433_v47 = vld [vmem:[%s3755_s26 + $0xa8] sm:$0xff]  ;;  %v419_v49 = vld [vmem:[%s3755_s26 + $0x38] sm:$0xff]  ;;  %v434_v50 = vld [vmem:[%s3755_s26 + $0xb0] sm:$0xff] }
  0x16   : > { %3114 = vmatprep.mubr.msk.f32.mxu1 %vm453_vm0, %v430_v28  ;;  %3214 = vmatpush1.bf16.msra.mxu1 %v3213_v26  ;;  %v420_v52 = vld [vmem:[%s3755_s26 + $0x40] sm:$0xff]  ;;  %v435_v57 = vld [vmem:[%s3755_s26 + $0xb8] sm:$0xff]  ;;  %v421_v58 = vld [vmem:[%s3755_s26 + $0x48] sm:$0xff] }
  0x17   : > { %3091 = vmatmul.mubr.msk.f32.gmra.mrb[2].mxu0 %vm453_vm0, %v415_v23  ;;  %3216 = vmatprep.subr.bf16.mxu1 %v3215_v29  ;;  %v436_v59 = vld [vmem:[%s3755_s26 + $0xc0] sm:$0xff]  ;;  %v422_v61 = vld [vmem:[%s3755_s26 + $0x50] sm:$0xff]  ;;  %v437_v62 = vld [vmem:[%s3755_s26 + $0xc8] sm:$0xff] }
  0x18   : > { %3093 = vmatprep.mubr.msk.f32.mxu0 %vm453_vm0, %v416_v27  ;;  %3250 = vmatpush3.bf16.msra.mxu0 %v3247_v19  ;;  %v423_v63 = vld [vmem:[%s3755_s26 + $0x58] sm:$0xff]  ;;  %v438_v0 = vld [vmem:[%s3755_s26 + $0xd0] sm:$0xff]  ;;  %v424_v1 = vld [vmem:[%s3755_s26 + $0x60] sm:$0xff]  ;;  %v3231_v19 = vpack.c.bf16 %v879_v18, %v876_v17 }
  0x19   : > { %3115 = vmatmul.mubr.msk.f32.gmra.mrb[2].mxu1 %vm453_vm0, %v431_v33  ;;  %3252 = vmatprep.subr.bf16.mxu0 %v3251_v43  ;;  %v439_v2 = vld [vmem:[%s3755_s26 + $0xd8] sm:$0xff]  ;;  %v425_v3 = vld [vmem:[%s3755_s26 + $0x68] sm:$0xff]  ;;  %v440_v4 = vld [vmem:[%s3755_s26 + $0xe0] sm:$0xff] }
  0x1a   : > { %3117 = vmatprep.mubr.msk.f32.mxu1 %vm453_vm0, %v432_v36  ;;  %3218 = vmatpush1.bf16.msra.mxu1 %v3217_v37  ;;  %v426_v5 = vld [vmem:[%s3755_s26 + $0x70] sm:$0xff]  ;;  %v441_v6 = vld [vmem:[%s3755_s26 + $0xe8] sm:$0xff]  ;;  %v427_v7 = vld [vmem:[%s3755_s26 + $0x78] sm:$0xff] }
  0x1b   : > { %3094 = vmatmul.mubr.msk.f32.gmra.mrb[4].mxu0 %vm453_vm0, %v417_v35  ;;  %3220 = vmatprep.subr.bf16.mxu1 %v3219_v40  ;;  %v874_v15 = vld [vmem:[%s5539_s3 + $0xe8] sm:$0xff]  ;;  %v875_v20 = vld [vmem:[%s5539_s3 + $0xf0] sm:$0xff]  ;;  %v877_v22 = vld [vmem:[%s5539_s3 + $0x100] sm:$0xff] }
  0x1c   : > { %3096 = vmatprep.mubr.msk.f32.mxu0 %vm453_vm0, %v418_v39  ;;  %3254 = vmatpush3.bf16.msra.mxu0 %v3251_v43  ;;  %v3259_v16 = vpack.c.bf16 %v874_v15, %v871_v13  ;;  %v3233_v23 = vpack.c.bf16 %v878_v21, %v875_v20  ;;  %v880_v24 = vld [vmem:[%s5539_s3 + $0x118] sm:$0xff]  ;;  %v882_v26 = vld [vmem:[%s5539_s3 + $0x128] sm:$0xff]  ;;  %v885_v27 = vld [vmem:[%s5539_s3 + $0x140] sm:$0xff] }
  0x1d   : > { %3118 = vmatmul.mubr.msk.f32.gmra.mrb[4].mxu1 %vm453_vm0, %v433_v47  ;;  %3256 = vmatprep.subr.bf16.mxu0 %v3255_v56  ;;  %v3263_v25 = vpack.c.bf16 %v880_v24, %v877_v22  ;;  %v3235_v28 = vpack.c.bf16 %v885_v27, %v882_v26  ;;  %v881_v29 = vld [vmem:[%s5539_s3 + $0x120] sm:$0xff]  ;;  %v884_v30 = vld [vmem:[%s5539_s3 + $0x138] sm:$0xff]  ;;  %v883_v31 = vld [vmem:[%s5539_s3 + $0x130] sm:$0xff] }
  0x1e   : > { %3120 = vmatprep.mubr.msk.f32.mxu1 %vm453_vm0, %v434_v50  ;;  %3222 = vmatpush1.bf16.msra.mxu1 %v3221_v51  ;;  %v3237_v32 = vpack.c.bf16 %v884_v30, %v881_v29  ;;  %v886_v33 = vld [vmem:[%s5539_s3 + $0x148] sm:$0xff]  ;;  %v888_v35 = vld [vmem:[%s5539_s3 + $0x158] sm:$0xff]  ;;  %v891_v36 = vld [vmem:[%s5539_s3 + $0x170] sm:$0xff]  ;;  %v3956_v51 = vand.u32 127, %v789_v46 }
  0x1f   : > { %3097 = vmatmul.mubr.msk.f32.gmra.mrb[6].mxu0 %vm453_vm0, %v419_v49  ;;  %3224 = vmatprep.subr.bf16.mxu1 %v3223_v53  ;;  %v3267_v34 = vpack.c.bf16 %v886_v33, %v883_v31  ;;  %v3239_v37 = vpack.c.bf16 %v891_v36, %v888_v35  ;;  %v887_v38 = vld [vmem:[%s5539_s3 + $0x150] sm:$0xff]  ;;  %v890_v39 = vld [vmem:[%s5539_s3 + $0x168] sm:$0xff]  ;;  %v889_v40 = vld [vmem:[%s5539_s3 + $0x160] sm:$0xff] }
  0x20   : > { %3099 = vmatprep.mubr.msk.f32.mxu0 %vm453_vm0, %v420_v52  ;;  %3258 = vmatpush3.bf16.msra.mxu0 %v3255_v56  ;;  %v3241_v41 = vpack.c.bf16 %v890_v39, %v887_v38  ;;  %v892_v42 = vld [vmem:[%s5539_s3 + $0x178] sm:$0xff]  ;;  %v3953_v48 = vld [vmem:[%s5538_s2] ss:$0 sm:$0xff]  ;;  %vm792_vm1 = vcmp.lt.s32.totalorder %v3956_v51, 64  ;;  %vm791_vm2 = vcmp.lt.s32.totalorder %v3956_v51, 32 }
  0x21   : > { %3121 = vmatmul.mubr.msk.f32.gmra.mrb[6].mxu1 %vm453_vm0, %v435_v57  ;;  %3260 = vmatprep.subr.bf16.mxu0 %v3259_v16  ;;  %v3271_v43 = vpack.c.bf16 %v892_v42, %v889_v40 }
  0x22   : > { %3123 = vmatprep.mubr.msk.f32.mxu1 %vm453_vm0, %v436_v59  ;;  %3226 = vmatpush1.bf16.msra.mxu1 %v3225_v60 }
  0x23   : > { %3100 = vmatmul.mubr.msk.f32.gmra.mrb[8].mxu0 %vm453_vm0, %v421_v58  ;;  %3228 = vmatprep.subr.bf16.mxu1 %v3227_v10 }
  0x24   : > { %3102 = vmatprep.mubr.msk.f32.mxu0 %vm453_vm0, %v422_v61  ;;  %3262 = vmatpush3.bf16.msra.mxu0 %v3259_v16 }
  0x25   : > { %3124 = vmatmul.mubr.msk.f32.gmra.mrb[8].mxu1 %vm453_vm0, %v437_v62  ;;  %3264 = vmatprep.subr.bf16.mxu0 %v3263_v25 }
  0x26   : > { %3126 = vmatprep.mubr.msk.f32.mxu1 %vm453_vm0, %v438_v0  ;;  %3230 = vmatpush1.bf16.msra.mxu1 %v3229_v14 }
  0x27   : > { %3103 = vmatmul.mubr.msk.f32.gmra.mrb[10].mxu0 %vm453_vm0, %v423_v63  ;;  %3232 = vmatprep.subr.bf16.mxu1 %v3231_v19 }
  0x28   : > { %3105 = vmatprep.mubr.msk.f32.mxu0 %vm453_vm0, %v424_v1  ;;  %3266 = vmatpush3.bf16.msra.mxu0 %v3263_v25 }
  0x29   : > { %3127 = vmatmul.mubr.msk.f32.gmra.mrb[10].mxu1 %vm453_vm0, %v439_v2  ;;  %3268 = vmatprep.subr.bf16.mxu0 %v3267_v34 }
  0x2a   : > { %3129 = vmatprep.mubr.msk.f32.mxu1 %vm453_vm0, %v440_v4  ;;  %3234 = vmatpush1.bf16.msra.mxu1 %v3233_v23 }
  0x2b   : > { %3106 = vmatmul.mubr.msk.f32.gmra.mrb[12].mxu0 %vm453_vm0, %v425_v3  ;;  %3236 = vmatprep.subr.bf16.mxu1 %v3235_v28 }
  0x2c   : > { %3108 = vmatprep.mubr.msk.f32.mxu0 %vm453_vm0, %v426_v5  ;;  %3270 = vmatpush3.bf16.msra.mxu0 %v3267_v34 }
  0x2d   : > { %3130 = vmatmul.mubr.msk.f32.gmra.mrb[12].mxu1 %vm453_vm0, %v441_v6  ;;  %3272 = vmatprep.subr.bf16.mxu0 %v3271_v43 }
  0x2e   : > { %3238 = vmatpush1.bf16.msra.mxu1 %v3237_v32  ;;  %957 = vmatprep.mubr.f32.mxu1 %v3650_v44 }
  0x2f   : > { %3109 = vmatmul.mubr.msk.f32.gmra.mrb[14].mxu0 %vm453_vm0, %v427_v7  ;;  %3240 = vmatprep.subr.bf16.mxu1 %v3239_v37 }
  0x30   : > { %3274 = vmatpush3.bf16.msra.mxu0 %v3271_v43 }
  0x32   : > { %3242 = vmatpush1.bf16.msra.mxu1 %v3241_v41 }
  0xe6   : > { %v3089_v45 = vpop.f32.mrb[0].mxu0 }
  0xe7   : > { %v610_v47 = vpop.f32.mrb[1].mxu0  ;;  %v616_v53 = vadd.f32 %v3089_v45, %v3953_v48 }
  0xe8   : > { %v3113_v49 = vpop.f32.mrb[0].mxu1  ;;  %v611_v55 = vadd.f32 %v3953_v48, %v610_v47 }
  0xe9   : > { %v690_v52 = vpop.f32.mrb[1].mxu1  ;;  %v696_v56 = vadd.f32 %v3113_v49, %v3953_v48  ;;  %v760_v0 = vmax.f32 %v616_v53, 0.0 }
  0xea   : > { %v3092_v50 = vpop.f32.mrb[2].mxu0  ;;  %v691_v58 = vadd.f32 %v3953_v48, %v690_v52  ;;  %v759_v4 = vmax.f32 %v611_v55, 0.0 }
  0xeb   : > { %v620_v54 = vpop.f32.mrb[3].mxu0  ;;  %v626_v57 = vadd.f32 %v3092_v50, %v3953_v48  ;;  %v3970_v6 = vmax.f32 %v696_v56, 0.0 }
  0xec   : > { %v3116_v59 = vpop.f32.mrb[2].mxu1  ;;  %v621_v60 = vadd.f32 %v3953_v48, %v620_v54  ;;  %v3976_v10 = vmax.f32 %v691_v58, 0.0 }
  0xed   : > { %v706_v62 = vadd.f32 %v3116_v59, %v3953_v48  ;;  %v700_v63 = vpop.f32.mrb[3].mxu1  ;;  %v762_v8 = vmax.f32 %v626_v57, 0.0 }
  0xee   : > { %v3095_v61 = vpop.f32.mrb[4].mxu0  ;;  %v701_v3 = vadd.f32 %v3953_v48, %v700_v63  ;;  %v761_v13 = vmax.f32 %v621_v60, 0.0 }
  0xef   : > { %v636_v1 = vadd.f32 %v3095_v61, %v3953_v48  ;;  %v630_v2 = vpop.f32.mrb[5].mxu0  ;;  %v3972_v7 = vmax.f32 %v706_v62, 0.0 }
  0xf0   : > { %v631_v5 = vadd.f32 %v3953_v48, %v630_v2  ;;  %v3978_v11 = vmax.f32 %v701_v3, 0.0  ;;  %v3119_v12 = vpop.f32.mrb[4].mxu1 }
  0xf1   : > { %v3974_v9 = vmax.f32 %v636_v1, 0.0  ;;  %v716_v16 = vadd.f32 %v3119_v12, %v3953_v48  ;;  %v710_v17 = vpop.f32.mrb[5].mxu1  ;;  %v3985_v18 = vsel %vm792_vm1, %v3970_v6, %v3972_v7 }
  0xf2   : > { %v763_v14 = vmax.f32 %v631_v5, 0.0  ;;  %v3098_v15 = vpop.f32.mrb[6].mxu0  ;;  %v3995_v22 = vsel %vm792_vm1, %v3976_v10, %v3978_v11  ;;  %v711_v23 = vadd.f32 %v3953_v48, %v710_v17 }
  0xf3   : > { %v794_v19 = vsel %vm792_vm1, %v762_v8, %v3974_v9  ;;  %v646_v20 = vadd.f32 %v3098_v15, %v3953_v48  ;;  %v640_v21 = vpop.f32.mrb[7].mxu0  ;;  %v4003_v27 = vmax.f32 %v716_v16, 0.0 }
  0xf4   : > { %v793_v24 = vsel %vm792_vm1, %v761_v13, %v763_v14  ;;  %v641_v25 = vadd.f32 %v3953_v48, %v640_v21  ;;  %v820_v26 = vsel %vm791_vm2, %v760_v0, %v794_v19  ;;  %v4009_v30 = vmax.f32 %v711_v23, 0.0  ;;  %v3122_v31 = vpop.f32.mrb[6].mxu1 }
  0xf5   : > { %v4005_v28 = vmax.f32 %v646_v20, 0.0  ;;  %v819_v29 = vsel %vm791_vm2, %v759_v4, %v793_v24  ;;  %v726_v34 = vadd.f32 %v3122_v31, %v3953_v48  ;;  %v720_v35 = vpop.f32.mrb[7].mxu1  ;;  %v810_v36 = vsel %vm792_vm1, %v3972_v7, %v4003_v27 }
  0xf6   : > { %v4011_v32 = vmax.f32 %v641_v25, 0.0  ;;  %v3101_v33 = vpop.f32.mrb[8].mxu0  ;;  %958 = vmatmul.mubr.f32.vlgmr.msra.gmra.mrb[14].mxu1 %v819_v29  ;;  %3164 = vmatprep.mubr.f32.mxu0 %v819_v29  ;;  %v809_v40 = vsel %vm792_vm1, %v3978_v11, %v4009_v30  ;;  %v721_v52 = vadd.f32 %v3953_v48, %v720_v35  ;;  %v4051_v56 = vsel %vm791_vm2, %v3970_v6, %v810_v36 }
  0xf7   : > { %v656_v37 = vadd.f32 %v3101_v33, %v3953_v48  ;;  %v650_v38 = vpop.f32.mrb[9].mxu0  ;;  %3165 = vmatmul.mubr.f32.vlgmr.msra.gmra.mrb[16].mxu0 %v820_v26  ;;  %963 = vmatprep.mubr.f32.mxu1 %v3650_v44  ;;  %v796_v39 = vsel %vm792_vm1, %v3974_v9, %v4005_v28  ;;  %v4034_v45 = vmax.f32 %v726_v34, 0.0  ;;  %v4043_v50 = vsel %vm791_vm2, %v3976_v10, %v809_v40 }
  0xf8   : > { %v651_v41 = vadd.f32 %v3953_v48, %v650_v38  ;;  %v795_v42 = vsel %vm792_vm1, %v763_v14, %v4011_v32  ;;  %v822_v43 = vsel %vm791_vm2, %v762_v8, %v796_v39  ;;  %v3125_v53 = vpop.f32.mrb[8].mxu1  ;;  %v781_v63 = vmax.f32 %v721_v52, 0.0 }
  0xf9   : > { %v4036_v47 = vmax.f32 %v656_v37, 0.0  ;;  %v821_v49 = vsel %vm791_vm2, %v761_v13, %v795_v42  ;;  %v736_v57 = vadd.f32 %v3125_v53, %v3953_v48  ;;  %v730_v58 = vpop.f32.mrb[9].mxu1  ;;  %v812_v59 = vsel %vm792_vm1, %v4003_v27, %v4034_v45 }
  0xfa   : > { %v4046_v54 = vmax.f32 %v651_v41, 0.0  ;;  %v3104_v55 = vpop.f32.mrb[10].mxu0  ;;  %964 = vmatmul.mubr.f32.gmra.mrb[16].mxu1 %v820_v26  ;;  %3167 = vmatprep.mubr.f32.mxu0 %v821_v49  ;;  %v731_v0 = vadd.f32 %v3953_v48, %v730_v58  ;;  %v811_v12 = vsel %vm792_vm1, %v4009_v30, %v781_v63 }
  0xfb   : > { %v666_v60 = vadd.f32 %v3104_v55, %v3953_v48  ;;  %v660_v61 = vpop.f32.mrb[11].mxu0  ;;  %3168 = vmatmul.mubr.f32.gmra.mrb[18].mxu0 %v822_v43  ;;  %969 = vmatprep.mubr.f32.mxu1 %v3650_v44  ;;  %v798_v62 = vsel %vm792_vm1, %v4005_v28, %v4036_v47  ;;  %v4075_v4 = vmax.f32 %v736_v57, 0.0 }
  0xfc   : > { %v661_v1 = vadd.f32 %v3953_v48, %v660_v61  ;;  %v797_v2 = vsel %vm792_vm1, %v4011_v32, %v4046_v54  ;;  %v4073_v3 = vsel %vm791_vm2, %v3974_v9, %v798_v62  ;;  %v4084_v13 = vmax.f32 %v731_v0, 0.0  ;;  %v3128_v15 = vpop.f32.mrb[10].mxu1 }
  0xfd   : > { %v4077_v5 = vmax.f32 %v666_v60, 0.0  ;;  %v823_v8 = vsel %vm791_vm2, %v763_v14, %v797_v2  ;;  %v4091_v9 = vsel %vm791_vm2, %v3978_v11, %v811_v12  ;;  %v4096_v14 = vsel %vm791_vm2, %v3972_v7, %v812_v59  ;;  %v740_v20 = vpop.f32.mrb[11].mxu1 }
  0xfe   : > { %v4086_v16 = vmax.f32 %v661_v1, 0.0  ;;  %v3107_v17 = vpop.f32.mrb[12].mxu0  ;;  %970 = vmatmul.mubr.f32.gmra.mrb[18].mxu1 %v821_v49  ;;  %3170 = vmatprep.mubr.f32.mxu0 %v823_v8  ;;  %v746_v19 = vadd.f32 %v3128_v15, %v3953_v48  ;;  %v813_v7 = vsel %vm792_vm1, %v781_v63, %v4084_v13  ;;  %v741_v35 = vadd.f32 %v3953_v48, %v740_v20  ;;  %v1637_v20 = vld [vmem:[%s5541_s5 + $0x30] sm:$0xff] }
  0xff   : > { %v676_v21 = vadd.f32 %v3107_v17, %v3953_v48  ;;  %v670_v23 = vpop.f32.mrb[13].mxu0  ;;  %3171 = vmatmul.mubr.f32.gmra.mrb[20].mxu0 %v4073_v3  ;;  %975 = vmatprep.mubr.f32.mxu1 %v3650_v44  ;;  %v800_v11 = vsel %vm792_vm1, %v4036_v47, %v4077_v5  ;;  %v4123_v34 = vsel %vm791_vm2, %v4009_v30, %v813_v7  ;;  %v1632_v17 = vld [vmem:[%s5541_s5 + $0x8] sm:$0xff]  ;;  %v1645_v7 = vld [vmem:[%s5541_s5 + $0x70] sm:$0xff] }
 0x100   : > { %v671_v24 = vadd.f32 %v3953_v48, %v670_v23  ;;  %v799_v25 = vsel %vm792_vm1, %v4046_v54, %v4086_v16  ;;  %v826_v26 = vsel %vm791_vm2, %v4005_v28, %v800_v11  ;;  %v786_v29 = vmax.f32 %v746_v19, 0.0  ;;  %v3131_v36 = vpop.f32.mrb[12].mxu1  ;;  %v1631_v19 = vld [vmem:[%s5541_s5] sm:$0xff]  ;;  %v1646_v23 = vld [vmem:[%s5541_s5 + $0x78] sm:$0xff]  ;;  %v1652_v11 = vld [vmem:[%s5541_s5 + $0xa8] sm:$0xff] }
 0x101   : > { %v772_v31 = vmax.f32 %v676_v21, 0.0  ;;  %v825_v33 = vsel %vm791_vm2, %v4011_v32, %v799_v25  ;;  %v814_v28 = vsel %vm792_vm1, %v4034_v45, %v4075_v4  ;;  %v756_v39 = vadd.f32 %v3131_v36, %v3953_v48  ;;  %v750_v32 = vpop.f32.mrb[13].mxu1  ;;  %v1651_v25 = vld [vmem:[%s5541_s5 + $0xa0] sm:$0xff] }
 0x102   : > { %v771_v37 = vmax.f32 %v671_v24, 0.0  ;;  %v3110_v38 = vpop.f32.mrb[14].mxu0  ;;  %976 = vmatmul.mubr.f32.gmra.mrb[20].mxu1 %v822_v43  ;;  %3173 = vmatprep.mubr.f32.mxu0 %v825_v33  ;;  %v816_v30 = vsel %vm792_vm1, %v4075_v4, %v786_v29  ;;  %v785_v43 = vmax.f32 %v741_v35, 0.0  ;;  %v4142_v49 = vsel %vm791_vm2, %v4003_v27, %v814_v28  ;;  %v1649_v35 = vld [vmem:[%s5541_s5 + $0x90] sm:$0xff]  ;;  %v1656_v28 = vld [vmem:[%s5541_s5 + $0xc8] sm:$0xff] }
 0x103   : > { %v686_v40 = vadd.f32 %v3110_v38, %v3953_v48  ;;  %v680_v41 = vpop.f32.mrb[15].mxu0  ;;  %3174 = vmatmul.mubr.f32.gmra.mrb[22].mxu0 %v826_v26  ;;  %981 = vmatprep.mubr.f32.mxu1 %v3650_v44  ;;  %v802_v42 = vsel %vm792_vm1, %v4077_v5, %v772_v31  ;;  %v788_v57 = vmax.f32 %v756_v39, 0.0  ;;  %v751_v60 = vadd.f32 %v3953_v48, %v750_v32  ;;  %v1664_v38 = vld [vmem:[%s5541_s5 + $0x108] sm:$0xff]  ;;  %v1657_v32 = vld [vmem:[%s5541_s5 + $0xd0] sm:$0xff] }
 0x104   : > { %v681_v52 = vadd.f32 %v3953_v48, %v680_v41  ;;  %v801_v53 = vsel %vm792_vm1, %v4086_v16, %v771_v37  ;;  %v828_v55 = vsel %vm791_vm2, %v4036_v47, %v802_v42  ;;  %v815_v27 = vsel %vm792_vm1, %v4084_v13, %v785_v43 }
 0x105   : > { %v774_v58 = vmax.f32 %v686_v40, 0.0  ;;  %v827_v59 = vsel %vm791_vm2, %v4046_v54, %v801_v53  ;;  %v4160_v62 = vsel %vm791_vm2, %v781_v63, %v815_v27  ;;  %v4165_v47 = vsel %vm791_vm2, %v4034_v45, %v816_v30  ;;  %v1663_v30 = vld [vmem:[%s5541_s5 + $0x100] sm:$0xff]  ;;  %v1662_v40 = vld [vmem:[%s5541_s5 + $0xf8] sm:$0xff]  ;;  %v1668_v53 = vld [vmem:[%s5541_s5 + $0x128] sm:$0xff] }
 0x106   : > { %v773_v61 = vmax.f32 %v681_v52, 0.0  ;;  %982 = vmatmul.mubr.f32.gmra.mrb[22].mxu1 %v823_v8  ;;  %3176 = vmatprep.mubr.f32.mxu0 %v827_v59  ;;  %v818_v54 = vsel %vm792_vm1, %v786_v29, %v788_v57  ;;  %v787_v1 = vmax.f32 %v751_v60, 0.0  ;;  %v3277_v21 = vpack.c.bf16 %v1637_v20, %v1631_v19  ;;  %v1650_v29 = vld [vmem:[%s5541_s5 + $0x98] sm:$0xff]  ;;  %v1667_v27 = vld [vmem:[%s5541_s5 + $0x120] sm:$0xff]  ;;  %v1673_v60 = vld [vmem:[%s5541_s5 + $0x150] sm:$0xff] }
 0x107   : > { %3177 = vmatmul.mubr.f32.gmra.mrb[24].mxu0 %v828_v55  ;;  %987 = vmatprep.mubr.f32.mxu1 %v3650_v44  ;;  %v804_v48 = vsel %vm792_vm1, %v772_v31, %v774_v58  ;;  %v806_v0 = vsel %vm792_vm1, %v774_v58, %v3970_v6  ;;  %v834_v63 = vsel %vm791_vm2, %v774_v58, %v3985_v18  ;;  %v1670_v57 = vld [vmem:[%s5541_s5 + $0x138] sm:$0xff]  ;;  %v1699_v19 = vld [vmem:[%s5541_s5 + $0x220] sm:$0xff] }
 0x108   : > { %v803_v45 = vsel %vm792_vm1, %v771_v37, %v773_v61  ;;  %v830_v2 = vsel %vm791_vm2, %v4077_v5, %v804_v48  ;;  %v805_v8 = vsel %vm792_vm1, %v773_v61, %v3976_v10  ;;  %v832_v12 = vsel %vm791_vm2, %v772_v31, %v806_v0  ;;  %v1680_v0 = vld [vmem:[%s5541_s5 + $0x188] sm:$0xff] }
 0x109   : > { %v829_v6 = vsel %vm791_vm2, %v4086_v16, %v803_v45  ;;  %v831_v18 = vsel %vm791_vm2, %v771_v37, %v805_v8  ;;  %v833_v15 = vsel %vm791_vm2, %v773_v61, %v3995_v22  ;;  %v817_v5 = vsel %vm792_vm1, %v785_v43, %v787_v1  ;;  %v1634_v22 = vld [vmem:[%s5541_s5 + $0x18] sm:$0xff]  ;;  %v1655_v43 = vld [vmem:[%s5541_s5 + $0xc0] sm:$0xff] }
 0x10a   : > { %988 = vmatmul.mubr.f32.gmra.mrb[24].mxu1 %v4073_v3  ;;  %3179 = vmatprep.mubr.f32.mxu0 %v829_v6  ;;  %v843_v10 = vsel %vm791_vm2, %v4084_v13, %v817_v5  ;;  %v844_v16 = vsel %vm791_vm2, %v4075_v4, %v818_v54  ;;  %v1639_v4 = vld [vmem:[%s5541_s5 + $0x40] sm:$0xff]  ;;  %v3311_v24 = vpack.c.bf16 %v1652_v11, %v1646_v23  ;;  %v1658_v37 = vld [vmem:[%s5541_s5 + $0xd8] sm:$0xff] }
 0x10b   : > { %3180 = vmatmul.mubr.f32.gmra.mrb[26].mxu0 %v830_v2  ;;  %993 = vmatprep.mubr.f32.mxu1 %v3650_v44  ;;  %v3313_v31 = vpack.c.bf16 %v1651_v25, %v1645_v7  ;;  %v3315_v39 = vpack.c.bf16 %v1664_v38, %v1658_v37  ;;  %v3317_v41 = vpack.c.bf16 %v1663_v30, %v1657_v32  ;;  %v1675_v54 = vld [vmem:[%s5541_s5 + $0x160] sm:$0xff]  ;;  %v1682_v1 = vld [vmem:[%s5541_s5 + $0x198] sm:$0xff]  ;;  %v1721_v30 = vld [vmem:[%s5541_s5 + $0x2d0] sm:$0xff] }
 0x10c   : > { %3182 = vmatprep.mubr.f32.mxu0 %v831_v18  ;;  %v3283_v42 = vpack.c.bf16 %v1662_v40, %v1656_v28  ;;  %v1679_v8 = vld [vmem:[%s5541_s5 + $0x180] sm:$0xff]  ;;  %v1710_v23 = vld [vmem:[%s5541_s5 + $0x278] sm:$0xff] }
 0x10d   : > { %v1687_v5 = vld [vmem:[%s5541_s5 + $0x1c0] sm:$0xff]  ;;  %v1706_v11 = vld [vmem:[%s5541_s5 + $0x258] sm:$0xff] }
 0x10e   : > { %994 = vmatmul.mubr.f32.gmra.mrb[26].mxu1 %v825_v33  ;;  %v1703_v25 = vld [vmem:[%s5541_s5 + $0x240] sm:$0xff]  ;;  %v1722_v37 = vld [vmem:[%s5541_s5 + $0x2d8] sm:$0xff] }
 0x10f   : > { %3183 = vmatmul.mubr.f32.gmra.mrb[28].mxu0 %v832_v12  ;;  %999 = vmatprep.mubr.f32.mxu1 %v3650_v44  ;;  %v1718_v38 = vld [vmem:[%s5541_s5 + $0x2b8] sm:$0xff]  ;;  %v1715_v32 = vld [vmem:[%s5541_s5 + $0x2a0] sm:$0xff] }
 0x110   : > { %3185 = vmatprep.mubr.f32.mxu0 %v833_v15 }
 0x112   : > { %1000 = vmatmul.mubr.f32.gmra.mrb[28].mxu1 %v826_v26  ;;  %v1644_v26 = vld [vmem:[%s5541_s5 + $0x68] sm:$0xff] }
 0x113   : > { %3186 = vmatmul.mubr.f32.gmra.mrb[30].mxu0 %v834_v63  ;;  %1005 = vmatprep.mubr.f32.mxu1 %v3650_v44  ;;  %v3279_v33 = vpack.c.bf16 %v1650_v29, %v1644_v26  ;;  %v1709_v26 = vld [vmem:[%s5541_s5 + $0x270] sm:$0xff] }
 0x114   : > { %3188 = vmatprep.mubr.f32.mxu0 %v4043_v50 }
 0x116   : > { %1006 = vmatmul.mubr.f32.gmra.mrb[30].mxu1 %v827_v59  ;;  %v1676_v59 = vld [vmem:[%s5541_s5 + $0x168] sm:$0xff] }
 0x117   : > { %1011 = vmatprep.mubr.f32.mxu1 %v3650_v44  ;;  %3189 = vmatmul.mubr.f32.gmra.mrb[32].mxu0 %v4051_v56  ;;  %v3319_v61 = vpack.c.bf16 %v1676_v59, %v1670_v57 }
 0x118   : > { %3191 = vmatprep.mubr.f32.mxu0 %v4091_v9 }
 0x11a   : > { %1012 = vmatmul.mubr.f32.gmra.mrb[32].mxu1 %v828_v55  ;;  %v1674_v55 = vld [vmem:[%s5541_s5 + $0x158] sm:$0xff] }
 0x11b   : > { %1017 = vmatprep.mubr.f32.mxu1 %v3650_v44  ;;  %3192 = vmatmul.mubr.f32.gmra.mrb[34].mxu0 %v4096_v14  ;;  %v3287_v58 = vpack.c.bf16 %v1674_v55, %v1668_v53  ;;  %v1642_v53 = vld [vmem:[%s5541_s5 + $0x58] sm:$0xff] }
 0x11c   : > { %3194 = vmatprep.mubr.f32.mxu0 %v4123_v34 }
 0x11e   : > { %1018 = vmatmul.mubr.f32.gmra.mrb[34].mxu1 %v829_v6 }
 0x11f   : > { %1023 = vmatprep.mubr.f32.mxu1 %v3650_v44  ;;  %3195 = vmatmul.mubr.f32.gmra.mrb[36].mxu0 %v4142_v49 }
 0x120   : > { %3197 = vmatprep.mubr.f32.mxu0 %v4160_v62 }
 0x122   : > { %1024 = vmatmul.mubr.f32.gmra.mrb[36].mxu1 %v830_v2  ;;  %v1688_v2 = vld [vmem:[%s5541_s5 + $0x1c8] sm:$0xff] }
 0x123   : > { %1029 = vmatprep.mubr.f32.mxu1 %v3650_v44  ;;  %3198 = vmatmul.mubr.f32.gmra.mrb[38].mxu0 %v4165_v47  ;;  %v3323_v6 = vpack.c.bf16 %v1688_v2, %v1682_v1 }
 0x124   : > { %3200 = vmatprep.mubr.f32.mxu0 %v843_v10 }
 0x126   : > { %1030 = vmatmul.mubr.f32.gmra.mrb[38].mxu1 %v831_v18 }
 0x127   : > { %1035 = vmatprep.mubr.f32.mxu1 %v3650_v44  ;;  %3201 = vmatmul.mubr.f32.gmra.mrb[40].mxu0 %v844_v16 }
 0x128   : > { %1791 = vmatprep.mubr.f32.mxu0 %v3650_v44 }
 0x12a   : > { %1036 = vmatmul.mubr.f32.gmra.mrb[40].mxu1 %v832_v12  ;;  %v1685_v12 = vld [vmem:[%s5541_s5 + $0x1b0] sm:$0xff] }
 0x12b   : > { %1041 = vmatprep.mubr.f32.mxu1 %v3650_v44  ;;  %v3293_v18 = vpack.c.bf16 %v1685_v12, %v1679_v8 }
 0x12e   : > { %1042 = vmatmul.mubr.f32.gmra.mrb[42].mxu1 %v833_v15  ;;  %v1681_v15 = vld [vmem:[%s5541_s5 + $0x190] sm:$0xff] }
 0x12f   : > { %1047 = vmatprep.mubr.f32.mxu1 %v3650_v44 }
 0x132   : > { %1048 = vmatmul.mubr.f32.gmra.mrb[44].mxu1 %v834_v63  ;;  %v1686_v63 = vld [vmem:[%s5541_s5 + $0x1b8] sm:$0xff] }
 0x133   : > { %1053 = vmatprep.mubr.f32.mxu1 %v3650_v44  ;;  %v3291_v45 = vpack.c.bf16 %v1686_v63, %v1680_v0 }
 0x136   : > { %1054 = vmatmul.mubr.f32.gmra.mrb[46].mxu1 %v4043_v50  ;;  %v1640_v50 = vld [vmem:[%s5541_s5 + $0x48] sm:$0xff] }
 0x137   : > { %1059 = vmatprep.mubr.f32.mxu1 %v3650_v44  ;;  %v3307_v3 = vpack.c.bf16 %v1640_v50, %v1634_v22  ;;  %v1698_v22 = vld [vmem:[%s5541_s5 + $0x218] sm:$0xff] }
 0x138   : > { %v1694_v50 = vld [vmem:[%s5541_s5 + $0x1f8] sm:$0xff] }
 0x139   : > { %3308 = vmatprep.subr.bf16.mxu1 %v3307_v3  ;;  %v1700_v3 = vld [vmem:[%s5541_s5 + $0x228] sm:$0xff] }
 0x13a   : > { %1060 = vmatmul.mubr.f32.gmra.mrb[48].mxu1 %v4051_v56  ;;  %v1633_v56 = vld [vmem:[%s5541_s5 + $0x10] sm:$0xff] }
 0x13b   : > { %1065 = vmatprep.mubr.f32.mxu1 %v3650_v44  ;;  %v3309_v13 = vpack.c.bf16 %v1639_v4, %v1633_v56  ;;  %v1691_v4 = vld [vmem:[%s5541_s5 + $0x1e0] sm:$0xff] }
 0x13d   : > { %3310 = vmatpush1.bf16.msra.mxu1 %v3309_v13  ;;  %v1697_v13 = vld [vmem:[%s5541_s5 + $0x210] sm:$0xff] }
 0x13e   : > { %1066 = vmatmul.mubr.f32.gmra.mrb[50].mxu1 %v4091_v9  ;;  %v1638_v9 = vld [vmem:[%s5541_s5 + $0x38] sm:$0xff]  ;;  %3312 = vmatprep.subr.bf16.mxu1 %v3311_v24  ;;  %v1712_v24 = vld [vmem:[%s5541_s5 + $0x288] sm:$0xff] }
 0x13f   : > { %1071 = vmatprep.mubr.f32.mxu1 %v3650_v44  ;;  %v3331_v29 = vpack.c.bf16 %v1712_v24, %v1706_v11 }
 0x141   : > { %3314 = vmatpush1.bf16.msra.mxu1 %v3313_v31  ;;  %v3301_v31 = vpack.c.bf16 %v1709_v26, %v1703_v25 }
 0x142   : > { %1072 = vmatmul.mubr.f32.gmra.mrb[52].mxu1 %v4096_v14  ;;  %v3275_v14 = vpack.c.bf16 %v1638_v9, %v1632_v17  ;;  %3316 = vmatprep.subr.bf16.mxu1 %v3315_v39  ;;  %v3327_v17 = vpack.c.bf16 %v1700_v3, %v1694_v50  ;;  %v3297_v9 = vpack.c.bf16 %v1697_v13, %v1691_v4  ;;  %v1724_v39 = vld [vmem:[%s5541_s5 + $0x2e8] sm:$0xff] }
 0x143   : > { %1077 = vmatprep.mubr.f32.mxu1 %v3650_v44  ;;  %v3335_v40 = vpack.c.bf16 %v1724_v39, %v1718_v38 }
 0x144   : > { %3276 = vmatprep.subr.bf16.mxu0 %v3275_v14  ;;  %v1693_v14 = vld [vmem:[%s5541_s5 + $0x1f0] sm:$0xff] }
 0x145   : > { %3278 = vmatpush1.bf16.msra.mxu0 %v3277_v21  ;;  %3318 = vmatpush1.bf16.msra.mxu1 %v3317_v41  ;;  %v3329_v20 = vpack.c.bf16 %v1699_v19, %v1693_v14  ;;  %v1704_v21 = vld [vmem:[%s5541_s5 + $0x248] sm:$0xff]  ;;  %v3305_v41 = vpack.c.bf16 %v1721_v30, %v1715_v32 }
 0x146   : > { %1078 = vmatmul.mubr.f32.gmra.mrb[54].mxu1 %v4123_v34  ;;  %v1643_v34 = vld [vmem:[%s5541_s5 + $0x60] sm:$0xff]  ;;  %3280 = vmatprep.subr.bf16.mxu0 %v3279_v33  ;;  %v3299_v7 = vpack.c.bf16 %v1710_v23, %v1704_v21  ;;  %v1705_v33 = vld [vmem:[%s5541_s5 + $0x250] sm:$0xff] }
 0x147   : > { %1083 = vmatprep.mubr.f32.mxu1 %v3650_v44  ;;  %v3281_v36 = vpack.c.bf16 %v1649_v35, %v1643_v34  ;;  %3320 = vmatprep.subr.bf16.mxu1 %v3319_v61  ;;  %v1711_v34 = vld [vmem:[%s5541_s5 + $0x280] sm:$0xff] }
 0x148   : > { %v3333_v35 = vpack.c.bf16 %v1711_v34, %v1705_v33 }
 0x149   : > { %3282 = vmatpush1.bf16.msra.mxu0 %v3281_v36  ;;  %v1716_v36 = vld [vmem:[%s5541_s5 + $0x2a8] sm:$0xff] }
 0x14a   : > { %1084 = vmatmul.mubr.f32.gmra.mrb[56].mxu1 %v4142_v49  ;;  %v1661_v49 = vld [vmem:[%s5541_s5 + $0xf0] sm:$0xff]  ;;  %3284 = vmatprep.subr.bf16.mxu0 %v3283_v42  ;;  %v3303_v28 = vpack.c.bf16 %v1722_v37, %v1716_v36 }
 0x14b   : > { %1089 = vmatprep.mubr.f32.mxu1 %v3650_v44  ;;  %v3285_v52 = vpack.c.bf16 %v1661_v49, %v1655_v43  ;;  %v1717_v42 = vld [vmem:[%s5541_s5 + $0x2b0] sm:$0xff]  ;;  %v1723_v43 = vld [vmem:[%s5541_s5 + $0x2e0] sm:$0xff] }
 0x14c   : > { %v3337_v49 = vpack.c.bf16 %v1723_v43, %v1717_v42 }
 0x14d   : > { %3286 = vmatpush1.bf16.msra.mxu0 %v3285_v52  ;;  %v1636_v52 = vld [vmem:[%s5541_s5 + $0x28] sm:$0xff] }
 0x14e   : > { %1090 = vmatmul.mubr.f32.gmra.mrb[58].mxu1 %v4160_v62  ;;  %v3289_v62 = vpack.c.bf16 %v1673_v60, %v1667_v27  ;;  %3288 = vmatprep.subr.bf16.mxu0 %v3287_v58  ;;  %v3339_v55 = vpack.c.bf16 %v1642_v53, %v1636_v52 }
 0x14f   : > { %1095 = vmatprep.mubr.f32.mxu1 %v3650_v44 }
 0x151   : > { %3290 = vmatpush1.bf16.msra.mxu0 %v3289_v62 }
 0x152   : > { %1096 = vmatmul.mubr.f32.gmra.mrb[60].mxu1 %v4165_v47  ;;  %v1669_v47 = vld [vmem:[%s5541_s5 + $0x130] sm:$0xff]  ;;  %3292 = vmatprep.subr.bf16.mxu0 %v3291_v45 }
 0x153   : > { %1101 = vmatprep.mubr.f32.mxu1 %v3650_v44  ;;  %v3321_v48 = vpack.c.bf16 %v1675_v54, %v1669_v47 }
 0x155   : > { %3322 = vmatpush1.bf16.msra.mxu1 %v3321_v48  ;;  %3294 = vmatpush1.bf16.msra.mxu0 %v3293_v18 }
 0x156   : > { %1102 = vmatmul.mubr.f32.gmra.mrb[62].mxu1 %v843_v10  ;;  %v3325_v10 = vpack.c.bf16 %v1687_v5, %v1681_v15  ;;  %3324 = vmatprep.subr.bf16.mxu1 %v3323_v6 }
 0x157   : > { %1106 = vmatprep.mubr.f32.mxu1 %v3650_v44 }
 0x159   : > { %3326 = vmatpush1.bf16.msra.mxu1 %v3325_v10 }
 0x15a   : > { %1107 = vmatmul.mubr.f32.gmra.mrb[64].mxu1 %v844_v16  ;;  %v1692_v16 = vld [vmem:[%s5541_s5 + $0x1e8] sm:$0xff]  ;;  %3328 = vmatprep.subr.bf16.mxu1 %v3327_v17 }
 0x15b   : > { %1880 = vmatprep.mubr.f32.mxu1 %v3650_v44  ;;  %v3295_v56 = vpack.c.bf16 %v1698_v22, %v1692_v16 }
 0x15d   : > { %3296 = vmatprep.subr.bf16.mxu0 %v3295_v56  ;;  %3330 = vmatpush1.bf16.msra.mxu1 %v3329_v20 }
 0x15e   : > { %3298 = vmatpush1.bf16.msra.mxu0 %v3297_v9  ;;  %3332 = vmatprep.subr.bf16.mxu1 %v3331_v29 }
 0x15f   : > { %3300 = vmatprep.subr.bf16.mxu0 %v3299_v7 }
 0x161   : > { %3334 = vmatpush1.bf16.msra.mxu1 %v3333_v35 }
 0x162   : > { %3302 = vmatpush1.bf16.msra.mxu0 %v3301_v31  ;;  %3336 = vmatprep.subr.bf16.mxu1 %v3335_v40 }
 0x163   : > { %3304 = vmatprep.subr.bf16.mxu0 %v3303_v28 }
 0x165   : > { %3338 = vmatpush1.bf16.msra.mxu1 %v3337_v49 }
 0x166   : > { %3306 = vmatpush1.bf16.msra.mxu0 %v3305_v41 }
 0x167   : > { %3340 = vmatprep.subr.bf16.mxu0 %v3339_v55 }
 0x1c9   : > { %v959_v57 = vpop.f32.mrb[14].mxu1 }
 0x1ca   : > { %v961_v58 = vpop.f32.mrb[15].mxu1  ;;  %v3166_v59 = vpop.f32.mrb[16].mxu0 }
 0x1cb   : > { %v1455_v27 = vrot.slane %v3166_v59, 2  ;;  %v1177_v60 = vpop.f32.mrb[17].mxu0  ;;  %v1331_v0 = vrot.slane %v961_v58, 1 }
 0x1cc   : > { %v1454_v61 = vrot.slane %v1177_v60, 2 }
 0x1cd   : > { %v965_v62 = vpop.f32.mrb[16].mxu1 }
 0x1ce   : > { %v1456_v47 = vsel %vm1453_vm3, %v1454_v61, %v1455_v27  ;;  %v967_v54 = vpop.f32.mrb[17].mxu1  ;;  %v3169_v48 = vpop.f32.mrb[18].mxu0 }
 0x1cf   : > { %v1332_v63 = vrot.slane %v967_v54, 1  ;;  %v1459_v1 = vrot.slane %v3169_v48, 2  ;;  %v1187_v45 = vpop.f32.mrb[19].mxu0 }
 0x1d0   : > { %v1457_v2 = vrot.slane %v1187_v45, 2 }
 0x1d1   : > { %v1333_v8 = vsel %vm1330_vm4, %v1331_v0, %v1332_v63  ;;  %v971_v12 = vpop.f32.mrb[18].mxu1 }
 0x1d2   : > { %v1404_v6 = vadd.f32 %v1333_v8, %v959_v57  ;;  %v1458_v18 = vsel %vm1453_vm3, %v1455_v27, %v1457_v2  ;;  %v1460_v15 = vsel %vm1453_vm3, %v1457_v2, %v1459_v1  ;;  %v973_v5 = vpop.f32.mrb[19].mxu1  ;;  %v3172_v10 = vpop.f32.mrb[20].mxu0 }
 0x1d3   : > { %v1334_v16 = vrot.slane %v973_v5, 1  ;;  %v1463_v22 = vrot.slane %v3172_v10, 2  ;;  %v1197_v50 = vpop.f32.mrb[21].mxu0 }
 0x1d4   : > { %v1527_v56 = vadd.f32 %v1456_v47, %v1404_v6  ;;  %v1461_v3 = vrot.slane %v1197_v50, 2 }
 0x1d5   : > { %v1335_v4 = vsel %vm1330_vm4, %v1332_v63, %v1334_v16  ;;  %v977_v13 = vpop.f32.mrb[20].mxu1 }
 0x1d6   : > { %v1405_v17 = vadd.f32 %v1335_v4, %v965_v62  ;;  %v1462_v9 = vsel %vm1453_vm3, %v1459_v1, %v1461_v3  ;;  %v1464_v14 = vsel %vm1453_vm3, %v1461_v3, %v1463_v22  ;;  %v979_v19 = vpop.f32.mrb[21].mxu1  ;;  %v3175_v20 = vpop.f32.mrb[22].mxu0 }
 0x1d7   : > { %v1336_v21 = vrot.slane %v979_v19, 1  ;;  %v1467_v23 = vrot.slane %v3175_v20, 2  ;;  %v1207_v11 = vpop.f32.mrb[23].mxu0 }
 0x1d8   : > { %v1528_v7 = vadd.f32 %v1458_v18, %v1405_v17  ;;  %v1465_v24 = vrot.slane %v1207_v11, 2 }
 0x1d9   : > { %v1337_v25 = vsel %vm1330_vm4, %v1334_v16, %v1336_v21  ;;  %v983_v26 = vpop.f32.mrb[22].mxu1 }
 0x1da   : > { %v1406_v29 = vadd.f32 %v1337_v25, %v971_v12  ;;  %v1466_v31 = vsel %vm1453_vm3, %v1463_v22, %v1465_v24  ;;  %v1468_v33 = vsel %vm1453_vm3, %v1465_v24, %v1467_v23  ;;  %v985_v34 = vpop.f32.mrb[23].mxu1  ;;  %v3178_v35 = vpop.f32.mrb[24].mxu0 }
 0x1db   : > { %v1338_v36 = vrot.slane %v985_v34, 1  ;;  %v1471_v37 = vrot.slane %v3178_v35, 2  ;;  %v1217_v38 = vpop.f32.mrb[25].mxu0 }
 0x1dc   : > { %v1529_v28 = vadd.f32 %v1460_v15, %v1406_v29  ;;  %v1469_v39 = vrot.slane %v1217_v38, 2 }
 0x1dd   : > { %v1339_v32 = vsel %vm1330_vm4, %v1336_v21, %v1338_v36  ;;  %v989_v30 = vpop.f32.mrb[24].mxu1 }
 0x1de   : > { %v1551_v40 = vmax.f32 %v1527_v56, %v1529_v28  ;;  %v1407_v41 = vadd.f32 %v1339_v32, %v977_v13  ;;  %v1470_v42 = vsel %vm1453_vm3, %v1467_v23, %v1469_v39  ;;  %v4454_v43 = vsel %vm1453_vm3, %v1469_v39, %v1471_v37  ;;  %v991_v49 = vpop.f32.mrb[25].mxu1  ;;  %v3181_v52 = vpop.f32.mrb[26].mxu0 }
 0x1df   : > { %v1340_v53 = vrot.slane %v991_v49, 1  ;;  %v1475_v55 = vrot.slane %v3181_v52, 2  ;;  %v1227_v57 = vpop.f32.mrb[27].mxu0 }
 0x1e0   : > { %1553 = vst [vmem:[#allocation2] sm:$0xff] %v1551_v40  ;;  %v1530_v58 = vadd.f32 %v1462_v9, %v1407_v41  ;;  %v1473_v59 = vrot.slane %v1227_v57, 2 }
 0x1e1   : > { %v1341_v27 = vsel %vm1330_vm4, %v1338_v36, %v1340_v53  ;;  %v995_v60 = vpop.f32.mrb[26].mxu1 }
 0x1e2   : > { %v1552_v61 = vmax.f32 %v1528_v7, %v1530_v58  ;;  %v1408_v62 = vadd.f32 %v1341_v27, %v983_v26  ;;  %v4458_v47 = vsel %vm1453_vm3, %v1471_v37, %v1473_v59  ;;  %v4461_v54 = vsel %vm1453_vm3, %v1473_v59, %v1475_v55  ;;  %v997_v48 = vpop.f32.mrb[27].mxu1  ;;  %v3184_v0 = vpop.f32.mrb[28].mxu0 }
 0x1e3   : > { %v1342_v63 = vrot.slane %v997_v48, 1  ;;  %v1479_v1 = vrot.slane %v3184_v0, 2  ;;  %v1237_v45 = vpop.f32.mrb[29].mxu0 }
 0x1e4   : > { %1554 = vst [vmem:[#allocation2 + $0x8] sm:$0xff] %v1552_v61  ;;  %v1531_v2 = vadd.f32 %v1464_v14, %v1408_v62  ;;  %v1477_v8 = vrot.slane %v1237_v45, 2 }
 0x1e5   : > { %v1343_v12 = vsel %vm1330_vm4, %v1340_v53, %v1342_v63  ;;  %v1001_v6 = vpop.f32.mrb[28].mxu1 }
 0x1e6   : > { %v1409_v18 = vadd.f32 %v1343_v12, %v989_v30  ;;  %v4465_v15 = vsel %vm1453_vm3, %v1475_v55, %v1477_v8  ;;  %v4468_v5 = vsel %vm1453_vm3, %v1477_v8, %v1479_v1  ;;  %v1003_v10 = vpop.f32.mrb[29].mxu1  ;;  %v3187_v16 = vpop.f32.mrb[30].mxu0 }
 0x1e7   : > { %v1344_v22 = vrot.slane %v1003_v10, 1  ;;  %v1483_v50 = vrot.slane %v3187_v16, 2  ;;  %v1247_v56 = vpop.f32.mrb[31].mxu0 }
 0x1e8   : > { %v1532_v3 = vadd.f32 %v1466_v31, %v1409_v18  ;;  %v1481_v4 = vrot.slane %v1247_v56, 2 }
 0x1e9   : > { %v1345_v13 = vsel %vm1330_vm4, %v1342_v63, %v1344_v22  ;;  %v1007_v17 = vpop.f32.mrb[30].mxu1 }
 0x1ea   : > { %v1410_v9 = vadd.f32 %v1345_v13, %v995_v60  ;;  %v4472_v14 = vsel %vm1453_vm3, %v1479_v1, %v1481_v4  ;;  %v4475_v19 = vsel %vm1453_vm3, %v1481_v4, %v1483_v50  ;;  %v1009_v20 = vpop.f32.mrb[31].mxu1  ;;  %v3190_v21 = vpop.f32.mrb[32].mxu0 }
 0x1eb   : > { %v1346_v23 = vrot.slane %v1009_v20, 1  ;;  %v1487_v11 = vrot.slane %v3190_v21, 2  ;;  %v1257_v7 = vpop.f32.mrb[33].mxu0 }
 0x1ec   : > { %v1533_v24 = vadd.f32 %v1468_v33, %v1410_v9  ;;  %v1485_v25 = vrot.slane %v1257_v7, 2 }
 0x1ed   : > { %v1347_v26 = vsel %vm1330_vm4, %v1344_v22, %v1346_v23  ;;  %v1013_v29 = vpop.f32.mrb[32].mxu1 }
 0x1ee   : > { %v1555_v31 = vmax.f32 %v1531_v2, %v1533_v24  ;;  %v1411_v34 = vadd.f32 %v1347_v26, %v1001_v6  ;;  %v1015_v35 = vpop.f32.mrb[33].mxu1  ;;  %v4479_v36 = vsel %vm1453_vm3, %v1483_v50, %v1485_v25  ;;  %v4482_v37 = vsel %vm1453_vm3, %v1485_v25, %v1487_v11  ;;  %v3193_v38 = vpop.f32.mrb[34].mxu0 }
 0x1ef   : > { %v1348_v28 = vrot.slane %v1015_v35, 1  ;;  %v1491_v39 = vrot.slane %v3193_v38, 2  ;;  %v1267_v32 = vpop.f32.mrb[35].mxu0 }
 0x1f0   : > { %1557 = vst [vmem:[#allocation2 + $0x10] sm:$0xff] %v1555_v31  ;;  %v1534_v30 = vadd.f32 %v1470_v42, %v1411_v34  ;;  %v1489_v33 = vrot.slane %v1267_v32, 2 }
 0x1f1   : > { %v1349_v40 = vsel %vm1330_vm4, %v1346_v23, %v1348_v28  ;;  %v1019_v41 = vpop.f32.mrb[34].mxu1 }
 0x1f2   : > { %v1556_v49 = vmax.f32 %v1532_v3, %v1534_v30  ;;  %v1412_v52 = vadd.f32 %v1349_v40, %v1007_v17  ;;  %v1021_v53 = vpop.f32.mrb[35].mxu1  ;;  %v4486_v55 = vsel %vm1453_vm3, %v1487_v11, %v1489_v33  ;;  %v4489_v57 = vsel %vm1453_vm3, %v1489_v33, %v1491_v39  ;;  %v3196_v58 = vpop.f32.mrb[36].mxu0 }
 0x1f3   : > { %v1350_v59 = vrot.slane %v1021_v53, 1  ;;  %v1495_v27 = vrot.slane %v3196_v58, 2  ;;  %v1277_v60 = vpop.f32.mrb[37].mxu0 }
 0x1f4   : > { %1558 = vst [vmem:[#allocation2 + $0x18] sm:$0xff] %v1556_v49  ;;  %v1535_v42 = vadd.f32 %v4454_v43, %v1412_v52  ;;  %v1493_v61 = vrot.slane %v1277_v60, 2  ;;  %v1575_v49 = vld [vmem:[#allocation2] ss:$2 sm:$0xff]  ;;  %v1587_v52 = vld [vmem:[#allocation2 + $0x1] ss:$2 sm:$0xff] }
 0x1f5   : > { %v1351_v62 = vsel %vm1330_vm4, %v1348_v28, %v1350_v59  ;;  %v1025_v48 = vpop.f32.mrb[36].mxu1  ;;  %v1598_v60 = vmax.f32 %v1575_v49, %v1587_v52  ;;  %v1659_v52 = vld [vmem:[%s5541_s5 + $0xe0] sm:$0xff] }
 0x1f6   : > { %v1413_v0 = vadd.f32 %v1351_v62, %v1013_v29  ;;  %v1027_v63 = vpop.f32.mrb[37].mxu1  ;;  %v4494_v1 = vsel %vm1453_vm3, %v1491_v39, %v1493_v61  ;;  %v4497_v45 = vsel %vm1453_vm3, %v1493_v61, %v1495_v27  ;;  %v3199_v2 = vpop.f32.mrb[38].mxu0 }
 0x1f7   : > { %v1352_v8 = vrot.slane %v1027_v63, 1  ;;  %v1499_v12 = vrot.slane %v3199_v2, 2  ;;  %v1287_v6 = vpop.f32.mrb[39].mxu0 }
 0x1f8   : > { %v1536_v18 = vadd.f32 %v4458_v47, %v1413_v0  ;;  %v1497_v10 = vrot.slane %v1287_v6, 2 }
 0x1f9   : > { %v1353_v43 = vsel %vm1330_vm4, %v1350_v59, %v1352_v8  ;;  %v1031_v16 = vpop.f32.mrb[38].mxu1 }
 0x1fa   : > { %v1414_v22 = vadd.f32 %v1353_v43, %v1019_v41  ;;  %v1033_v50 = vpop.f32.mrb[39].mxu1  ;;  %v4502_v56 = vsel %vm1453_vm3, %v1495_v27, %v1497_v10  ;;  %v4505_v3 = vsel %vm1453_vm3, %v1497_v10, %v1499_v12  ;;  %v3202_v4 = vpop.f32.mrb[40].mxu0 }
 0x1fb   : > { %v1354_v13 = vrot.slane %v1033_v50, 1  ;;  %v1297_v17 = vpop.f32.mrb[41].mxu0  ;;  %v1577_v30 = vld [vmem:[#allocation2 + $0x10] ss:$2 sm:$0xff]  ;;  %v1589_v33 = vld [vmem:[#allocation2 + $0x11] ss:$2 sm:$0xff] }
 0x1fc   : > { %v1537_v9 = vadd.f32 %v4461_v54, %v1414_v22  ;;  %v1501_v20 = vrot.slane %v1297_v17, 2  ;;  %v1599_v58 = vmax.f32 %v1577_v30, %v1589_v33  ;;  %v1635_v50 = vld [vmem:[%s5541_s5 + $0x20] sm:$0xff] }
 0x1fd   : > { %v1355_v47 = vsel %vm1330_vm4, %v1352_v8, %v1354_v13  ;;  %v1037_v21 = vpop.f32.mrb[40].mxu1 }
 0x1fe   : > { %v1559_v23 = vmax.f32 %v1535_v42, %v1537_v9  ;;  %v1415_v11 = vadd.f32 %v1355_v47, %v1025_v48  ;;  %v1039_v7 = vpop.f32.mrb[41].mxu1  ;;  %v4510_v24 = vsel %vm1453_vm3, %v1499_v12, %v1501_v20  ;;  %v1648_v9 = vld [vmem:[%s5541_s5 + $0x88] sm:$0xff]  ;;  %v1654_v20 = vld [vmem:[%s5541_s5 + $0xb8] sm:$0xff] }
 0x1ff   : > { %v1356_v25 = vrot.slane %v1039_v7, 1 }
 0x200   : > { %1561 = vst [vmem:[#allocation2 + $0x20] sm:$0xff] %v1559_v23  ;;  %v1538_v26 = vadd.f32 %v4465_v15, %v1415_v11 }
 0x201   : > { %v1357_v29 = vsel %vm1330_vm4, %v1354_v13, %v1356_v25  ;;  %v1043_v31 = vpop.f32.mrb[42].mxu1 }
 0x202   : > { %v1560_v34 = vmax.f32 %v1536_v18, %v1538_v26  ;;  %v1416_v35 = vadd.f32 %v1357_v29, %v1031_v16  ;;  %v1045_v54 = vpop.f32.mrb[43].mxu1 }
 0x203   : > { %v1358_v38 = vrot.slane %v1045_v54, 1  ;;  %v1653_v54 = vld [vmem:[%s5541_s5 + $0xb0] sm:$0xff] }
 0x204   : > { %1562 = vst [vmem:[#allocation2 + $0x28] sm:$0xff] %v1560_v34  ;;  %v1539_v28 = vadd.f32 %v4468_v5, %v1416_v35  ;;  %v4521_v5 = vld [vmem:[%s5540_s4] ss:$0 sm:$0xff]  ;;  %v3343_v34 = vpack.c.bf16 %v1654_v20, %v1648_v9 }
 0x205   : > { %v1359_v39 = vsel %vm1330_vm4, %v1356_v25, %v1358_v38  ;;  %v1049_v32 = vpop.f32.mrb[44].mxu1  ;;  %v1611_v6 = vadd.f32 %v4521_v5, %v1598_v60  ;;  %v1647_v35 = vld [vmem:[%s5541_s5 + $0x80] sm:$0xff] }
 0x206   : > { %v1417_v40 = vadd.f32 %v1359_v39, %v1037_v21  ;;  %v1051_v41 = vpop.f32.mrb[45].mxu1  ;;  %v1666_v39 = vld [vmem:[%s5541_s5 + $0x118] sm:$0xff] }
 0x207   : > { %v1360_v15 = vrot.slane %v1051_v41, 1  ;;  %v1617_v23 = vmax.f32 %v1611_v6, 0.0 }
 0x208   : > { %v1540_v53 = vadd.f32 %v4472_v14, %v1417_v40  ;;  %v4525_v14 = vadd.f32 %v4521_v5, %v1599_v58  ;;  %v3345_v40 = vpack.c.bf16 %v1653_v54, %v1647_v35  ;;  %v1672_v58 = vld [vmem:[%s5541_s5 + $0x148] sm:$0xff] }
 0x209   : > { %v1361_v59 = vsel %vm1330_vm4, %v1358_v38, %v1360_v15  ;;  %v1055_v27 = vpop.f32.mrb[46].mxu1 }
 0x20a   : > { %v1418_v42 = vadd.f32 %v1361_v59, %v1043_v31  ;;  %v1057_v61 = vpop.f32.mrb[47].mxu1  ;;  %v1618_v13 = vmax.f32 %v4525_v14, 0.0  ;;  %v1678_v59 = vld [vmem:[%s5541_s5 + $0x178] sm:$0xff]  ;;  %v1708_v14 = vld [vmem:[%s5541_s5 + $0x268] sm:$0xff] }
 0x20b   : > { %v1362_v62 = vrot.slane %v1057_v61, 1  ;;  %v1579_v48 = vld [vmem:[#allocation2 + $0x20] ss:$2 sm:$0xff]  ;;  %v1591_v0 = vld [vmem:[#allocation2 + $0x21] ss:$2 sm:$0xff] }
 0x20c   : > { %v1541_v63 = vadd.f32 %v4475_v19, %v1418_v42  ;;  %v1600_v2 = vmax.f32 %v1579_v48, %v1591_v0  ;;  %v1641_v19 = vld [vmem:[%s5541_s5 + $0x50] sm:$0xff]  ;;  %v1671_v48 = vld [vmem:[%s5541_s5 + $0x140] sm:$0xff] }
 0x20d   : > { %v1363_v8 = vsel %vm1330_vm4, %v1360_v15, %v1362_v62  ;;  %v1061_v12 = vpop.f32.mrb[48].mxu1  ;;  %v3341_v26 = vpack.c.bf16 %v1641_v19, %v1635_v50  ;;  %v1665_v15 = vld [vmem:[%s5541_s5 + $0x110] sm:$0xff] }
 0x20e   : > { %v1563_v18 = vmax.f32 %v1539_v28, %v1541_v63  ;;  %v1419_v10 = vadd.f32 %v1363_v8, %v1049_v32  ;;  %v1063_v43 = vpop.f32.mrb[49].mxu1  ;;  %v1613_v16 = vadd.f32 %v4521_v5, %v1600_v2  ;;  %v1660_v28 = vld [vmem:[%s5541_s5 + $0xe8] sm:$0xff]  ;;  %v3351_v2 = vpack.c.bf16 %v1678_v59, %v1672_v58  ;;  %v1677_v8 = vld [vmem:[%s5541_s5 + $0x170] sm:$0xff] }
 0x20f   : > { %v1364_v22 = vrot.slane %v1063_v43, 1  ;;  %v3347_v49 = vpack.c.bf16 %v1666_v39, %v1660_v28  ;;  %v3353_v9 = vpack.c.bf16 %v1677_v8, %v1671_v48  ;;  %v1713_v58 = vld [vmem:[%s5541_s5 + $0x290] sm:$0xff] }
 0x210   : > { %1565 = vst [vmem:[#allocation2 + $0x30] sm:$0xff] %v1563_v18  ;;  %v1542_v4 = vadd.f32 %v4479_v36, %v1419_v10  ;;  %v4538_v17 = vmax.f32 %v1613_v16, 0.0  ;;  %v1684_v18 = vld [vmem:[%s5541_s5 + $0x1a8] sm:$0xff]  ;;  %v1690_v10 = vld [vmem:[%s5541_s5 + $0x1d8] sm:$0xff] }
 0x211   : > { %v1365_v47 = vsel %vm1330_vm4, %v1362_v62, %v1364_v22  ;;  %v1067_v21 = vpop.f32.mrb[50].mxu1  ;;  %v3349_v62 = vpack.c.bf16 %v1665_v15, %v1659_v52  ;;  %v3355_v20 = vpack.c.bf16 %v1690_v10, %v1684_v18 }
 0x212   : > { %v1564_v11 = vmax.f32 %v1540_v53, %v1542_v4  ;;  %v1420_v7 = vadd.f32 %v1365_v47, %v1055_v27  ;;  %v1069_v25 = vpop.f32.mrb[51].mxu1  ;;  %v1623_v36 = vsel %vm792_vm1, %v1618_v13, %v4538_v17  ;;  %v1683_v47 = vld [vmem:[%s5541_s5 + $0x1a0] sm:$0xff] }
 0x213   : > { %v1366_v29 = vrot.slane %v1069_v25, 1  ;;  %v4554_v31 = vsel %vm791_vm2, %v1617_v23, %v1623_v36  ;;  %v1702_v25 = vld [vmem:[%s5541_s5 + $0x238] sm:$0xff] }
 0x214   : > { %1566 = vst [vmem:[#allocation2 + $0x38] sm:$0xff] %v1564_v11  ;;  %v1543_v38 = vadd.f32 %v4482_v37, %v1420_v7  ;;  %1792 = vmatmul.mubr.f32.vlgmr.msra.gmra.mrb[42].mxu0 %v4554_v31  ;;  %1881 = vmatmul.mubr.f32.vlgmr.msra.gmra.mrb[66].mxu1 %v4554_v31  ;;  %v1696_v7 = vld [vmem:[%s5541_s5 + $0x208] sm:$0xff] }
 0x215   : > { %v1367_v32 = vsel %vm1330_vm4, %v1364_v22, %v1366_v29  ;;  %v1073_v30 = vpop.f32.mrb[52].mxu1  ;;  %1797 = vmatprep.mubr.f32.mxu0 %v3650_v44  ;;  %1886 = vmatprep.mubr.f32.mxu1 %v3650_v44  ;;  %v3359_v39 = vpack.c.bf16 %v1702_v25, %v1696_v7 }
 0x216   : > { %v1421_v37 = vadd.f32 %v1367_v32, %v1061_v12  ;;  %v1075_v33 = vpop.f32.mrb[53].mxu1  ;;  %3342 = vmatpush1.bf16.msra.mxu0 %v3341_v26  ;;  %v1695_v32 = vld [vmem:[%s5541_s5 + $0x200] sm:$0xff] }
 0x217   : > { %v1368_v41 = vrot.slane %v1075_v33, 1  ;;  %3344 = vmatprep.subr.bf16.mxu0 %v3343_v34 }
 0x218   : > { %v1544_v53 = vadd.f32 %v4486_v55, %v1421_v37 }
 0x219   : > { %v1369_v27 = vsel %vm1330_vm4, %v1366_v29, %v1368_v41  ;;  %v1079_v60 = vpop.f32.mrb[54].mxu1 }
 0x21a   : > { %v1422_v42 = vadd.f32 %v1369_v27, %v1067_v21  ;;  %v1081_v61 = vpop.f32.mrb[55].mxu1  ;;  %3346 = vmatpush1.bf16.msra.mxu0 %v3345_v40  ;;  %v1689_v21 = vld [vmem:[%s5541_s5 + $0x1d0] sm:$0xff]  ;;  %v1720_v27 = vld [vmem:[%s5541_s5 + $0x2c8] sm:$0xff] }
 0x21b   : > { %v1370_v55 = vrot.slane %v1081_v61, 1  ;;  %v1581_v0 = vld [vmem:[#allocation2 + $0x30] ss:$2 sm:$0xff]  ;;  %v1593_v63 = vld [vmem:[#allocation2 + $0x31] ss:$2 sm:$0xff]  ;;  %3348 = vmatprep.subr.bf16.mxu0 %v3347_v49  ;;  %v3357_v54 = vpack.c.bf16 %v1689_v21, %v1683_v47 }
 0x21c   : > { %v1545_v12 = vadd.f32 %v4489_v57, %v1422_v42  ;;  %v1601_v6 = vmax.f32 %v1581_v0, %v1593_v63  ;;  %v1719_v0 = vld [vmem:[%s5541_s5 + $0x2c0] sm:$0xff] }
 0x21d   : > { %v1371_v43 = vsel %vm1330_vm4, %v1368_v41, %v1370_v55  ;;  %v1085_v16 = vpop.f32.mrb[56].mxu1 }
 0x21e   : > { %v1567_v22 = vmax.f32 %v1543_v38, %v1545_v12  ;;  %v1423_v50 = vadd.f32 %v1371_v43, %v1073_v30  ;;  %v1087_v19 = vpop.f32.mrb[57].mxu1  ;;  %v1614_v4 = vadd.f32 %v4521_v5, %v1601_v6  ;;  %3350 = vmatpush1.bf16.msra.mxu0 %v3349_v62  ;;  %v1701_v30 = vld [vmem:[%s5541_s5 + $0x230] sm:$0xff] }
 0x21f   : > { %v1372_v57 = vrot.slane %v1087_v19, 1  ;;  %3352 = vmatprep.subr.bf16.mxu0 %v3351_v2  ;;  %v3361_v49 = vpack.c.bf16 %v1701_v30, %v1695_v32  ;;  %v1725_v12 = vld [vmem:[%s5541_s5 + $0x2f0] sm:$0xff]  ;;  %v2135_v32 = vld [vmem:[%s5543_s7 + $0xc8] sm:$0xff]  ;;  %v2129_v30 = vld [vmem:[%s5543_s7 + $0x98] sm:$0xff] }
 0x220   : > { %1569 = vst [vmem:[#allocation2 + $0x40] sm:$0xff] %v1567_v22  ;;  %v1546_v23 = vadd.f32 %v4494_v1, %v1423_v50  ;;  %v4610_v11 = vmax.f32 %v1614_v4, 0.0  ;;  %v3369_v4 = vpack.c.bf16 %v1725_v12, %v1719_v0  ;;  %v2159_v0 = vld [vmem:[%s5543_s7 + $0x188] sm:$0xff] }
 0x221   : > { %v1373_v36 = vsel %vm1330_vm4, %v1370_v55, %v1372_v57  ;;  %v1091_v26 = vpop.f32.mrb[58].mxu1 }
 0x222   : > { %v1568_v29 = vmax.f32 %v1544_v53, %v1546_v23  ;;  %v1424_v34 = vadd.f32 %v1373_v36, %v1079_v60  ;;  %v1093_v35 = vpop.f32.mrb[59].mxu1  ;;  %v1624_v1 = vsel %vm792_vm1, %v4538_v17, %v4610_v11  ;;  %3354 = vmatpush1.bf16.msra.mxu0 %v3353_v9  ;;  %v1707_v53 = vld [vmem:[%s5541_s5 + $0x260] sm:$0xff]  ;;  %v1726_v60 = vld [vmem:[%s5541_s5 + $0x2f8] sm:$0xff] }
 0x223   : > { %v1374_v38 = vrot.slane %v1093_v35, 1  ;;  %v4627_v28 = vsel %vm791_vm2, %v1618_v13, %v1624_v1  ;;  %3356 = vmatprep.subr.bf16.mxu0 %v3355_v20  ;;  %v1714_v13 = vld [vmem:[%s5541_s5 + $0x298] sm:$0xff]  ;;  %v3365_v55 = vpack.c.bf16 %v1713_v58, %v1707_v53  ;;  %v3367_v8 = vpack.c.bf16 %v1726_v60, %v1720_v27  ;;  %v2151_v53 = vld [vmem:[%s5543_s7 + $0x148] sm:$0xff]  ;;  %v2142_v60 = vld [vmem:[%s5543_s7 + $0x100] sm:$0xff] }
 0x224   : > { %1570 = vst [vmem:[#allocation2 + $0x48] sm:$0xff] %v1568_v29  ;;  %v1547_v37 = vadd.f32 %v4497_v45, %v1424_v34  ;;  %1798 = vmatmul.mubr.f32.gmra.mrb[44].mxu0 %v4627_v28  ;;  %1887 = vmatmul.mubr.f32.gmra.mrb[68].mxu1 %v4627_v28  ;;  %v3363_v15 = vpack.c.bf16 %v1714_v13, %v1708_v14  ;;  %v2121_v29 = vld [vmem:[%s5543_s7 + $0x58] sm:$0xff]  ;;  %v2118_v34 = vld [vmem:[%s5543_s7 + $0x40] sm:$0xff] }
 0x225   : > { %v1375_v33 = vsel %vm1330_vm4, %v1372_v57, %v1374_v38  ;;  %v1097_v40 = vpop.f32.mrb[60].mxu1  ;;  %1803 = vmatprep.mubr.f32.mxu0 %v3650_v44  ;;  %1892 = vmatprep.mubr.f32.mxu1 %v3650_v44  ;;  %v2137_v14 = vld [vmem:[%s5543_s7 + $0xd8] sm:$0xff]  ;;  %v2126_v13 = vld [vmem:[%s5543_s7 + $0x80] sm:$0xff] }
 0x226   : > { %v1425_v45 = vadd.f32 %v1375_v33, %v1085_v16  ;;  %v1099_v41 = vpop.f32.mrb[61].mxu1  ;;  %3358 = vmatpush1.bf16.msra.mxu0 %v3357_v54  ;;  %v2112_v54 = vld [vmem:[%s5543_s7 + $0x10] sm:$0xff]  ;;  %v2134_v33 = vld [vmem:[%s5543_s7 + $0xc0] sm:$0xff]  ;;  %v2145_v58 = vld [vmem:[%s5543_s7 + $0x118] sm:$0xff] }
 0x227   : > { %v1376_v52 = vrot.slane %v1099_v41, 1  ;;  %3360 = vmatprep.subr.bf16.mxu0 %v3359_v39  ;;  %v2127_v39 = vld [vmem:[%s5543_s7 + $0x88] sm:$0xff]  ;;  %v2128_v41 = vld [vmem:[%s5543_s7 + $0x90] sm:$0xff]  ;;  %v2153_v27 = vld [vmem:[%s5543_s7 + $0x158] sm:$0xff] }
 0x228   : > { %v1548_v59 = vadd.f32 %v4502_v56, %v1425_v45  ;;  %v3377_v45 = vpack.c.bf16 %v2134_v33, %v2126_v13 }
 0x229   : > { %v1377_v42 = vsel %vm1330_vm4, %v1374_v38, %v1376_v52  ;;  %v1103_v61 = vpop.f32.mrb[62].mxu1  ;;  %v2120_v38 = vld [vmem:[%s5543_s7 + $0x50] sm:$0xff] }
 0x22a   : > { %v1426_v62 = vadd.f32 %v1377_v42, %v1091_v26  ;;  %v1104_v48 = vpop.f32.mrb[63].mxu1  ;;  %3362 = vmatpush1.bf16.msra.mxu0 %v3361_v49  ;;  %v2136_v49 = vld [vmem:[%s5543_s7 + $0xd0] sm:$0xff]  ;;  %v2150_v42 = vld [vmem:[%s5543_s7 + $0x140] sm:$0xff]  ;;  %v3443_v61 = vpack.c.bf16 %v2153_v27, %v2145_v58 }
 0x22b   : > { %v1378_v56 = vrot.slane %v1104_v48, 1  ;;  %v1583_v63 = vld [vmem:[#allocation2 + $0x40] ss:$2 sm:$0xff]  ;;  %v1595_v2 = vld [vmem:[#allocation2 + $0x41] ss:$2 sm:$0xff]  ;;  %3364 = vmatprep.subr.bf16.mxu0 %v3363_v15  ;;  %v2144_v48 = vld [vmem:[%s5543_s7 + $0x110] sm:$0xff] }
 0x22c   : > { %v1549_v6 = vadd.f32 %v4505_v3, %v1426_v62  ;;  %v1602_v18 = vmax.f32 %v1583_v63, %v1595_v2  ;;  %v2143_v15 = vld [vmem:[%s5543_s7 + $0x108] sm:$0xff]  ;;  %v3381_v62 = vpack.c.bf16 %v2150_v42, %v2142_v60  ;;  %v2161_v2 = vld [vmem:[%s5543_s7 + $0x198] sm:$0xff]  ;;  %v2222_v27 = vld [vmem:[%s5543_s7 + $0x380] sm:$0xff] }
 0x22d   : > { %v1379_v10 = vsel %vm1330_vm4, %v1376_v52, %v1378_v56  ;;  %v1108_v43 = vpop.f32.mrb[64].mxu1  ;;  %v3441_v52 = vpack.c.bf16 %v2136_v49, %v2128_v41  ;;  %v2167_v63 = vld [vmem:[%s5543_s7 + $0x1c8] sm:$0xff]  ;;  %v2230_v60 = vld [vmem:[%s5543_s7 + $0x3c0] sm:$0xff]  ;;  %v2224_v42 = vld [vmem:[%s5543_s7 + $0x390] sm:$0xff] }
 0x22e   : > { %v1571_v16 = vmax.f32 %v1547_v37, %v1549_v6  ;;  %v1427_v22 = vadd.f32 %v1379_v10, %v1097_v40  ;;  %v1109_v50 = vpop.f32.mrb[65].mxu1  ;;  %v1615_v19 = vadd.f32 %v4521_v5, %v1602_v18  ;;  %3366 = vmatpush1.bf16.msra.mxu0 %v3365_v55  ;;  %v3375_v37 = vpack.c.bf16 %v2135_v32, %v2127_v39  ;;  %v2152_v55 = vld [vmem:[%s5543_s7 + $0x150] sm:$0xff]  ;;  %v2158_v18 = vld [vmem:[%s5543_s7 + $0x180] sm:$0xff]  ;;  %v2209_v39 = vld [vmem:[%s5543_s7 + $0x318] sm:$0xff] }
 0x22f   : > { %3368 = vmatprep.subr.bf16.mxu0 %v3367_v8  ;;  %v3439_v40 = vpack.c.bf16 %v2137_v14, %v2129_v30  ;;  %v3445_v56 = vpack.c.bf16 %v2152_v55, %v2144_v48  ;;  %v2169_v8 = vld [vmem:[%s5543_s7 + $0x1d8] sm:$0xff]  ;;  %v3383_v12 = vpack.c.bf16 %v2167_v63, %v2159_v0  ;;  %v2166_v10 = vld [vmem:[%s5543_s7 + $0x1c0] sm:$0xff]  ;;  %v2160_v43 = vld [vmem:[%s5543_s7 + $0x190] sm:$0xff] }
 0x230   : > { %1573 = vst [vmem:[#allocation2 + $0x50] sm:$0xff] %v1571_v16  ;;  %v1550_v9 = vadd.f32 %v4510_v24, %v1427_v22  ;;  %v1621_v57 = vmax.f32 %v1615_v19, 0.0  ;;  %v3447_v6 = vpack.c.bf16 %v2169_v8, %v2161_v2  ;;  %v3385_v16 = vpack.c.bf16 %v2166_v10, %v2158_v18  ;;  %v2168_v22 = vld [vmem:[%s5543_s7 + $0x1d0] sm:$0xff]  ;;  %v2175_v50 = vld [vmem:[%s5543_s7 + $0x208] sm:$0xff]  ;;  %v2217_v30 = vld [vmem:[%s5543_s7 + $0x358] sm:$0xff] }
 0x231   : > { %v2183_v19 = vld [vmem:[%s5543_s7 + $0x248] sm:$0xff]  ;;  %v2214_v14 = vld [vmem:[%s5543_s7 + $0x340] sm:$0xff]  ;;  %v3459_v13 = vpack.c.bf16 %v2217_v30, %v2209_v39  ;;  %v2241_v63 = vld [vmem:[%s5543_s7 + $0x418] sm:$0xff] }
 0x232   : > { %v1572_v20 = vmax.f32 %v1548_v59, %v1550_v9  ;;  %v1625_v3 = vsel %vm792_vm1, %v4610_v11, %v1621_v57  ;;  %3370 = vmatpush1.bf16.msra.mxu0 %v3369_v4  ;;  %v3379_v59 = vpack.c.bf16 %v2151_v53, %v2143_v15  ;;  %v3449_v4 = vpack.c.bf16 %v2168_v22, %v2160_v43  ;;  %v2223_v41 = vld [vmem:[%s5543_s7 + $0x388] sm:$0xff]  ;;  %v2225_v15 = vld [vmem:[%s5543_s7 + $0x398] sm:$0xff]  ;;  %v2238_v8 = vld [vmem:[%s5543_s7 + $0x400] sm:$0xff] }
 0x233   : > { %v1629_v47 = vsel %vm791_vm2, %v4538_v17, %v1625_v3  ;;  %v3387_v9 = vpack.c.bf16 %v2183_v19, %v2175_v50  ;;  %v2174_v3 = vld [vmem:[%s5543_s7 + $0x200] sm:$0xff]  ;;  %v2233_v53 = vld [vmem:[%s5543_s7 + $0x3d8] sm:$0xff]  ;;  %v2239_v48 = vld [vmem:[%s5543_s7 + $0x408] sm:$0xff] }
 0x234   : > { %1574 = vst [vmem:[#allocation2 + $0x58] sm:$0xff] %v1572_v20  ;;  %1804 = vmatmul.mubr.f32.gmra.mrb[46].mxu0 %v1629_v47  ;;  %1893 = vmatmul.mubr.f32.gmra.mrb[70].mxu1 %v1629_v47  ;;  %v2185_v20 = vld [vmem:[%s5543_s7 + $0x258] sm:$0xff]  ;;  %v2247_v55 = vld [vmem:[%s5543_s7 + $0x448] sm:$0xff]  ;;  %v2240_v18 = vld [vmem:[%s5543_s7 + $0x410] sm:$0xff] }
 0x235   : > { %1809 = vmatprep.mubr.f32.mxu0 %v3650_v44  ;;  %1898 = vmatprep.mubr.f32.mxu1 %v3650_v44  ;;  %v2249_v2 = vld [vmem:[%s5543_s7 + $0x458] sm:$0xff]  ;;  %v2248_v10 = vld [vmem:[%s5543_s7 + $0x450] sm:$0xff]  ;;  %v2255_v22 = vld [vmem:[%s5543_s7 + $0x488] sm:$0xff] }
 0x236   : > { %v2263_v50 = vld [vmem:[%s5543_s7 + $0x4c8] sm:$0xff]  ;;  %v2257_v19 = vld [vmem:[%s5543_s7 + $0x498] sm:$0xff]  ;;  %v2294_v30 = vld [vmem:[%s5543_s7 + $0x5c0] sm:$0xff] }
 0x237   : > { %v2297_v39 = vld [vmem:[%s5543_s7 + $0x5d8] sm:$0xff] }
 0x23b   : > { %v1585_v21 = vld [vmem:[#allocation2 + $0x50] ss:$2 sm:$0xff]  ;;  %v1597_v24 = vld [vmem:[#allocation2 + $0x51] ss:$2 sm:$0xff] }
 0x23c   : > { %v1603_v23 = vmax.f32 %v1585_v21, %v1597_v24  ;;  %v2182_v21 = vld [vmem:[%s5543_s7 + $0x240] sm:$0xff]  ;;  %v2176_v24 = vld [vmem:[%s5543_s7 + $0x210] sm:$0xff] }
 0x23e   : > { %v1616_v7 = vadd.f32 %v4521_v5, %v1603_v23  ;;  %v2111_v5 = vld [vmem:[%s5543_s7 + $0x8] sm:$0xff]  ;;  %v2184_v23 = vld [vmem:[%s5543_s7 + $0x250] sm:$0xff] }
 0x240   : > { %v1622_v25 = vmax.f32 %v1616_v7, 0.0  ;;  %v3389_v7 = vpack.c.bf16 %v2182_v21, %v2174_v3  ;;  %v2256_v21 = vld [vmem:[%s5543_s7 + $0x490] sm:$0xff] }
 0x242   : > { %v1626_v36 = vsel %vm792_vm1, %v1621_v57, %v1622_v25  ;;  %v2177_v57 = vld [vmem:[%s5543_s7 + $0x218] sm:$0xff]  ;;  %v3453_v25 = vpack.c.bf16 %v2184_v23, %v2176_v24  ;;  %v2264_v24 = vld [vmem:[%s5543_s7 + $0x4d0] sm:$0xff] }
 0x243   : > { %v1630_v17 = vsel %vm791_vm2, %v4610_v11, %v1626_v36  ;;  %v2119_v11 = vld [vmem:[%s5543_s7 + $0x48] sm:$0xff]  ;;  %v3473_v23 = vpack.c.bf16 %v2264_v24, %v2256_v21 }
 0x244   : > { %1810 = vmatmul.mubr.f32.gmra.mrb[48].mxu0 %v1630_v17  ;;  %1899 = vmatmul.mubr.f32.gmra.mrb[72].mxu1 %v1630_v17  ;;  %v3371_v26 = vpack.c.bf16 %v2119_v11, %v2111_v5  ;;  %v2191_v36 = vld [vmem:[%s5543_s7 + $0x288] sm:$0xff]  ;;  %v2193_v5 = vld [vmem:[%s5543_s7 + $0x298] sm:$0xff] }
 0x245   : > { %1969 = vmatprep.mubr.f32.mxu0 %v3650_v44  ;;  %v2351_v24 = vld [vmem:[%s5543_s7 + $0x788] sm:$0xff] }
 0x246   : > { %3372 = vmatprep.subr.bf16.mxu1 %v3371_v26  ;;  %v2190_v26 = vld [vmem:[%s5543_s7 + $0x280] sm:$0xff] }
 0x248   : > { %1970 = vmatmul.mubr.f32.vlgmr.msra.gmra.mrb[50].mxu0 %v4554_v31  ;;  %v2113_v31 = vld [vmem:[%s5543_s7 + $0x18] sm:$0xff] }
 0x249   : > { %1975 = vmatprep.mubr.f32.mxu0 %v3650_v44  ;;  %v3435_v35 = vpack.c.bf16 %v2121_v29, %v2113_v31  ;;  %v2201_v31 = vld [vmem:[%s5543_s7 + $0x2d8] sm:$0xff]  ;;  %v2198_v29 = vld [vmem:[%s5543_s7 + $0x2c0] sm:$0xff] }
 0x24b   : > { %3436 = vmatprep.subr.bf16.mxu0 %v3435_v35  ;;  %v2192_v35 = vld [vmem:[%s5543_s7 + $0x290] sm:$0xff] }
 0x24c   : > { %1976 = vmatmul.mubr.f32.gmra.mrb[52].mxu0 %v4627_v28  ;;  %v3437_v28 = vpack.c.bf16 %v2120_v38, %v2112_v54  ;;  %v2207_v38 = vld [vmem:[%s5543_s7 + $0x308] sm:$0xff] }
 0x24d   : > { %1981 = vmatprep.mubr.f32.mxu0 %v3650_v44 }
 0x24e   : > { %3438 = vmatpush1.bf16.msra.mxu0 %v3437_v28  ;;  %v2215_v28 = vld [vmem:[%s5543_s7 + $0x348] sm:$0xff] }
 0x24f   : > { %3440 = vmatprep.subr.bf16.mxu0 %v3439_v40  ;;  %v3395_v32 = vpack.c.bf16 %v2215_v28, %v2207_v38  ;;  %v2208_v40 = vld [vmem:[%s5543_s7 + $0x310] sm:$0xff]  ;;  %v2289_v38 = vld [vmem:[%s5543_s7 + $0x598] sm:$0xff] }
 0x250   : > { %1982 = vmatmul.mubr.f32.gmra.mrb[54].mxu0 %v1629_v47  ;;  %v3451_v47 = vpack.c.bf16 %v2185_v20, %v2177_v57  ;;  %v2254_v57 = vld [vmem:[%s5543_s7 + $0x480] sm:$0xff] }
 0x251   : > { %1987 = vmatprep.mubr.f32.mxu0 %v3650_v44  ;;  %v2110_v44 = vld [vmem:[%s5543_s7] sm:$0xff] }
 0x252   : > { %v3373_v1 = vpack.c.bf16 %v2118_v34, %v2110_v44  ;;  %3442 = vmatpush1.bf16.msra.mxu0 %v3441_v52  ;;  %v3455_v44 = vpack.c.bf16 %v2201_v31, %v2193_v5  ;;  %v3393_v34 = vpack.c.bf16 %v2198_v29, %v2190_v26  ;;  %v2231_v52 = vld [vmem:[%s5543_s7 + $0x3c8] sm:$0xff]  ;;  %v2262_v20 = vld [vmem:[%s5543_s7 + $0x4c0] sm:$0xff]  ;;  %v2281_v5 = vld [vmem:[%s5543_s7 + $0x558] sm:$0xff] }
 0x253   : > { %3444 = vmatprep.subr.bf16.mxu0 %v3443_v61  ;;  %v3399_v58 = vpack.c.bf16 %v2231_v52, %v2223_v41  ;;  %v3401_v61 = vpack.c.bf16 %v2230_v60, %v2222_v27  ;;  %v2278_v31 = vld [vmem:[%s5543_s7 + $0x540] sm:$0xff]  ;;  %v2311_v41 = vld [vmem:[%s5543_s7 + $0x648] sm:$0xff]  ;;  %v2304_v60 = vld [vmem:[%s5543_s7 + $0x610] sm:$0xff] }
 0x254   : > { %1988 = vmatmul.mubr.f32.gmra.mrb[56].mxu0 %v1630_v17  ;;  %3374 = vmatpush1.bf16.msra.mxu1 %v3373_v1  ;;  %v2199_v17 = vld [vmem:[%s5543_s7 + $0x2c8] sm:$0xff]  ;;  %v2200_v1 = vld [vmem:[%s5543_s7 + $0x2d0] sm:$0xff] }
 0x255   : > { %3376 = vmatprep.subr.bf16.mxu1 %v3375_v37  ;;  %v3391_v11 = vpack.c.bf16 %v2199_v17, %v2191_v36  ;;  %v3457_v54 = vpack.c.bf16 %v2200_v1, %v2192_v35  ;;  %v2206_v37 = vld [vmem:[%s5543_s7 + $0x300] sm:$0xff]  ;;  %v2273_v36 = vld [vmem:[%s5543_s7 + $0x518] sm:$0xff]  ;;  %v2287_v1 = vld [vmem:[%s5543_s7 + $0x588] sm:$0xff] }
 0x256   : > { %3446 = vmatpush1.bf16.msra.mxu0 %v3445_v56  ;;  %v3397_v33 = vpack.c.bf16 %v2214_v14, %v2206_v37  ;;  %v3403_v56 = vpack.c.bf16 %v2247_v55, %v2239_v48  ;;  %v3475_v26 = vpack.c.bf16 %v2281_v5, %v2273_v36  ;;  %v3479_v37 = vpack.c.bf16 %v2297_v39, %v2289_v38  ;;  %v2327_v48 = vld [vmem:[%s5543_s7 + $0x6c8] sm:$0xff]  ;;  %v2321_v55 = vld [vmem:[%s5543_s7 + $0x698] sm:$0xff]  ;;  %v2358_v5 = vld [vmem:[%s5543_s7 + $0x7c0] sm:$0xff] }
 0x257   : > { %3448 = vmatprep.subr.bf16.mxu0 %v3447_v6  ;;  %v2246_v6 = vld [vmem:[%s5543_s7 + $0x440] sm:$0xff]  ;;  %v2361_v36 = vld [vmem:[%s5543_s7 + $0x7d8] sm:$0xff] }
 0x258   : > { %3378 = vmatpush1.bf16.msra.mxu1 %v3377_v45  ;;  %v2216_v45 = vld [vmem:[%s5543_s7 + $0x350] sm:$0xff]  ;;  %v3405_v43 = vpack.c.bf16 %v2246_v6, %v2238_v8  ;;  %v2125_v38 = vld [vmem:[%s5543_s7 + $0x78] sm:$0xff] }
 0x259   : > { %3380 = vmatprep.subr.bf16.mxu1 %v3379_v59  ;;  %v3461_v49 = vpack.c.bf16 %v2216_v45, %v2208_v40  ;;  %v3463_v59 = vpack.c.bf16 %v2233_v53, %v2225_v15  ;;  %v2303_v45 = vld [vmem:[%s5543_s7 + $0x608] sm:$0xff]  ;;  %v2313_v15 = vld [vmem:[%s5543_s7 + $0x658] sm:$0xff]  ;;  %v2302_v53 = vld [vmem:[%s5543_s7 + $0x600] sm:$0xff] }
 0x25a   : > { %3450 = vmatpush1.bf16.msra.mxu0 %v3449_v4  ;;  %v3407_v4 = vpack.c.bf16 %v2263_v50, %v2255_v22  ;;  %v3419_v52 = vpack.c.bf16 %v2311_v41, %v2303_v45  ;;  %v2320_v6 = vld [vmem:[%s5543_s7 + $0x690] sm:$0xff]  ;;  %v2337_v22 = vld [vmem:[%s5543_s7 + $0x718] sm:$0xff] }
 0x25b   : > { %3452 = vmatprep.subr.bf16.mxu0 %v3451_v47  ;;  %v3409_v47 = vpack.c.bf16 %v2262_v20, %v2254_v57 }
 0x25c   : > { %3382 = vmatpush1.bf16.msra.mxu1 %v3381_v62  ;;  %v2232_v62 = vld [vmem:[%s5543_s7 + $0x3d0] sm:$0xff] }
 0x25d   : > { %3384 = vmatprep.subr.bf16.mxu1 %v3383_v12  ;;  %v3465_v0 = vpack.c.bf16 %v2232_v62, %v2224_v42  ;;  %v3467_v12 = vpack.c.bf16 %v2249_v2, %v2241_v63  ;;  %v2312_v42 = vld [vmem:[%s5543_s7 + $0x650] sm:$0xff]  ;;  %v2319_v62 = vld [vmem:[%s5543_s7 + $0x688] sm:$0xff]  ;;  %v2318_v63 = vld [vmem:[%s5543_s7 + $0x680] sm:$0xff] }
 0x25e   : > { %3454 = vmatpush1.bf16.msra.mxu0 %v3453_v25  ;;  %v2279_v25 = vld [vmem:[%s5543_s7 + $0x548] sm:$0xff]  ;;  %v2326_v2 = vld [vmem:[%s5543_s7 + $0x6c0] sm:$0xff] }
 0x25f   : > { %3456 = vmatprep.subr.bf16.mxu0 %v3455_v44  ;;  %v2272_v44 = vld [vmem:[%s5543_s7 + $0x510] sm:$0xff] }
 0x260   : > { %3386 = vmatpush1.bf16.msra.mxu1 %v3385_v16  ;;  %v3469_v16 = vpack.c.bf16 %v2248_v10, %v2240_v18  ;;  %v2328_v18 = vld [vmem:[%s5543_s7 + $0x6d0] sm:$0xff] }
 0x261   : > { %3388 = vmatprep.subr.bf16.mxu1 %v3387_v9  ;;  %v2265_v9 = vld [vmem:[%s5543_s7 + $0x4d8] sm:$0xff]  ;;  %v3489_v10 = vpack.c.bf16 %v2328_v18, %v2320_v6 }
 0x262   : > { %3458 = vmatpush1.bf16.msra.mxu0 %v3457_v54  ;;  %v3471_v3 = vpack.c.bf16 %v2265_v9, %v2257_v19  ;;  %v2295_v54 = vld [vmem:[%s5543_s7 + $0x5c8] sm:$0xff]  ;;  %v2345_v19 = vld [vmem:[%s5543_s7 + $0x758] sm:$0xff]  ;;  %v2342_v9 = vld [vmem:[%s5543_s7 + $0x740] sm:$0xff] }
 0x263   : > { %3460 = vmatprep.subr.bf16.mxu0 %v3459_v13  ;;  %v3415_v28 = vpack.c.bf16 %v2295_v54, %v2287_v1  ;;  %v2288_v13 = vld [vmem:[%s5543_s7 + $0x590] sm:$0xff]  ;;  %v3491_v57 = vpack.c.bf16 %v2345_v19, %v2337_v22  ;;  %v2117_v1 = vld [vmem:[%s5543_s7 + $0x38] sm:$0xff]  ;;  %v2070_v19 = vld [vmem:[%s5542_s6] sm:$0x3] }
 0x264   : > { %3390 = vmatpush1.bf16.msra.mxu1 %v3389_v7  ;;  %v2271_v7 = vld [vmem:[%s5543_s7 + $0x508] sm:$0xff] }
 0x265   : > { %3392 = vmatprep.subr.bf16.mxu1 %v3391_v11  ;;  %v3411_v17 = vpack.c.bf16 %v2279_v25, %v2271_v7  ;;  %v2270_v11 = vld [vmem:[%s5543_s7 + $0x500] sm:$0xff]  ;;  %v2353_v7 = vld [vmem:[%s5543_s7 + $0x798] sm:$0xff] }
 0x266   : > { %3462 = vmatpush1.bf16.msra.mxu0 %v3461_v49  ;;  %v3413_v29 = vpack.c.bf16 %v2278_v31, %v2270_v11  ;;  %v2305_v49 = vld [vmem:[%s5543_s7 + $0x618] sm:$0xff]  ;;  %v3495_v11 = vpack.c.bf16 %v2361_v36, %v2353_v7 }
 0x267   : > { %3464 = vmatprep.subr.bf16.mxu0 %v3463_v59  ;;  %v3483_v59 = vpack.c.bf16 %v2313_v15, %v2305_v49 }
 0x268   : > { %3394 = vmatpush1.bf16.msra.mxu1 %v3393_v34  ;;  %v2280_v34 = vld [vmem:[%s5543_s7 + $0x550] sm:$0xff] }
 0x269   : > { %3396 = vmatprep.subr.bf16.mxu1 %v3395_v32  ;;  %v3477_v35 = vpack.c.bf16 %v2280_v34, %v2272_v44  ;;  %v2286_v32 = vld [vmem:[%s5543_s7 + $0x580] sm:$0xff]  ;;  %v2115_v34 = vld [vmem:[%s5543_s7 + $0x28] sm:$0xff] }
 0x26a   : > { %3466 = vmatpush1.bf16.msra.mxu0 %v3465_v0  ;;  %v3417_v14 = vpack.c.bf16 %v2294_v30, %v2286_v32  ;;  %v3423_v0 = vpack.c.bf16 %v2327_v48, %v2319_v62 }
 0x26b   : > { %3468 = vmatprep.subr.bf16.mxu0 %v3467_v12  ;;  %v3425_v12 = vpack.c.bf16 %v2326_v2, %v2318_v63 }
 0x26c   : > { %3398 = vmatpush1.bf16.msra.mxu1 %v3397_v33  ;;  %v2296_v33 = vld [vmem:[%s5543_s7 + $0x5d0] sm:$0xff] }
 0x26d   : > { %3400 = vmatprep.subr.bf16.mxu1 %v3399_v58  ;;  %v3481_v40 = vpack.c.bf16 %v2296_v33, %v2288_v13  ;;  %v2310_v58 = vld [vmem:[%s5543_s7 + $0x640] sm:$0xff] }
 0x26e   : > { %3470 = vmatpush1.bf16.msra.mxu0 %v3469_v16  ;;  %v3421_v27 = vpack.c.bf16 %v2310_v58, %v2302_v53  ;;  %v2343_v16 = vld [vmem:[%s5543_s7 + $0x748] sm:$0xff] }
 0x26f   : > { %3472 = vmatprep.subr.bf16.mxu0 %v3471_v3  ;;  %v2336_v3 = vld [vmem:[%s5543_s7 + $0x710] sm:$0xff] }
 0x270   : > { %3402 = vmatpush1.bf16.msra.mxu1 %v3401_v61  ;;  %v3485_v61 = vpack.c.bf16 %v2312_v42, %v2304_v60 }
 0x271   : > { %3404 = vmatprep.subr.bf16.mxu1 %v3403_v56  ;;  %v2329_v56 = vld [vmem:[%s5543_s7 + $0x6d8] sm:$0xff] }
 0x272   : > { %3474 = vmatpush1.bf16.msra.mxu0 %v3473_v23  ;;  %v3487_v8 = vpack.c.bf16 %v2329_v56, %v2321_v55  ;;  %v2359_v23 = vld [vmem:[%s5543_s7 + $0x7c8] sm:$0xff] }
 0x273   : > { %3476 = vmatprep.subr.bf16.mxu0 %v3475_v26  ;;  %v3431_v25 = vpack.c.bf16 %v2359_v23, %v2351_v24  ;;  %v2352_v26 = vld [vmem:[%s5543_s7 + $0x790] sm:$0xff] }
 0x274   : > { %3406 = vmatpush1.bf16.msra.mxu1 %v3405_v43  ;;  %v2335_v43 = vld [vmem:[%s5543_s7 + $0x708] sm:$0xff] }
 0x275   : > { %3408 = vmatprep.subr.bf16.mxu1 %v3407_v4  ;;  %v3427_v50 = vpack.c.bf16 %v2343_v16, %v2335_v43  ;;  %v2334_v4 = vld [vmem:[%s5543_s7 + $0x700] sm:$0xff] }
 0x276   : > { %3478 = vmatpush1.bf16.msra.mxu0 %v3477_v35  ;;  %v3429_v20 = vpack.c.bf16 %v2342_v9, %v2334_v4  ;;  %v2123_v35 = vld [vmem:[%s5543_s7 + $0x68] sm:$0xff] }
 0x277   : > { %3480 = vmatprep.subr.bf16.mxu0 %v3479_v37  ;;  %v3499_v54 = vpack.c.bf16 %v2123_v35, %v2115_v34 }
 0x278   : > { %3410 = vmatpush1.bf16.msra.mxu1 %v3409_v47  ;;  %v2344_v47 = vld [vmem:[%s5543_s7 + $0x750] sm:$0xff] }
 0x279   : > { %3412 = vmatprep.subr.bf16.mxu1 %v3411_v17  ;;  %v3493_v21 = vpack.c.bf16 %v2344_v47, %v2336_v3  ;;  %v2350_v17 = vld [vmem:[%s5543_s7 + $0x780] sm:$0xff] }
 0x27a   : > { %3482 = vmatpush1.bf16.msra.mxu0 %v3481_v40  ;;  %v3433_v31 = vpack.c.bf16 %v2358_v5, %v2350_v17 }
 0x27b   : > { %3484 = vmatprep.subr.bf16.mxu0 %v3483_v59 }
 0x27c   : > { %3414 = vmatpush1.bf16.msra.mxu1 %v3413_v29  ;;  %v2360_v29 = vld [vmem:[%s5543_s7 + $0x7d0] sm:$0xff] }
 0x27d   : > { %3416 = vmatprep.subr.bf16.mxu1 %v3415_v28  ;;  %v3497_v44 = vpack.c.bf16 %v2360_v29, %v2352_v26  ;;  %v3563_v28 = vpack.c.bf16 %v2125_v38, %v2117_v1  ;;  %v2114_v38 = vld [vmem:[%s5543_s7 + $0x20] sm:$0xff] }
 0x27e   : > { %3486 = vmatpush1.bf16.msra.mxu0 %v3485_v61 }
 0x27f   : > { %3488 = vmatprep.subr.bf16.mxu0 %v3487_v8 }
 0x280   : > { %3418 = vmatpush1.bf16.msra.mxu1 %v3417_v14 }
 0x281   : > { %3420 = vmatprep.subr.bf16.mxu1 %v3419_v52 }
 0x282   : > { %3490 = vmatpush1.bf16.msra.mxu0 %v3489_v10 }
 0x283   : > { %3492 = vmatprep.subr.bf16.mxu0 %v3491_v57 }
 0x284   : > { %3422 = vmatpush1.bf16.msra.mxu1 %v3421_v27 }
 0x285   : > { %3424 = vmatprep.subr.bf16.mxu1 %v3423_v0 }
 0x286   : > { %3494 = vmatpush1.bf16.msra.mxu0 %v3493_v21 }
 0x287   : > { %3496 = vmatprep.subr.bf16.mxu0 %v3495_v11 }
 0x288   : > { %3426 = vmatpush1.bf16.msra.mxu1 %v3425_v12  ;;  %v5091_v12 = vshrl.u32 %v789_v46, 7 }
 0x289   : > { %3428 = vmatprep.subr.bf16.mxu1 %v3427_v50 }
 0x28a   : > { %3498 = vmatpush1.bf16.msra.mxu0 %v3497_v44  ;;  %v5094_v43 = vsub.s32 0, %v5091_v12  ;;  %v5102_v47 = vsub.s32 1, %v5091_v12 }
 0x28b   : > { %3564 = vmatprep.subr.bf16.mxu0 %v3563_v28 }
 0x28c   : > { %3430 = vmatpush1.bf16.msra.mxu1 %v3429_v20  ;;  %v2075_v46 = vrot.slane %v2070_v19, %v5094_v43  ;;  %v2079_v5 = vrot.slane %v2070_v19, %v5102_v47 }
 0x28d   : > { %3432 = vmatprep.subr.bf16.mxu1 %v3431_v25 }
 0x290   : > { %3434 = vmatpush1.bf16.msra.mxu1 %v3433_v31  ;;  %v2098_v31 = vadd.s32 128, %v3956_v51 }
 0x291   : > { %3500 = vmatprep.subr.bf16.mxu1 %v3499_v54 }
 0x292   : > { %vm2103_vm5 = vcmp.lt.s32.totalorder %v2098_v31, 192 }
 0x2e7   : > { %v1793_v39 = vpop.f32.mrb[42].mxu0  ;;  %v1882_v32 = vpop.f32.mrb[66].mxu1 }
 0x2e8   : > { %v1795_v30 = vpop.f32.mrb[43].mxu0  ;;  %v1884_v37 = vpop.f32.mrb[67].mxu1  ;;  %v2002_v33 = vrot.slane %v1882_v32, 1  ;;  %v2116_v32 = vld [vmem:[%s5543_s7 + $0x30] sm:$0xff] }
 0x2e9   : > { %v2124_v30 = vld [vmem:[%s5543_s7 + $0x70] sm:$0xff]  ;;  %v2131_v37 = vld [vmem:[%s5543_s7 + $0xa8] sm:$0xff] }
 0x2f7   : > { %v1799_v14 = vpop.f32.mrb[44].mxu0  ;;  %v1888_v13 = vpop.f32.mrb[68].mxu1 }
 0x2f8   : > { %v2003_v40 = vrot.slane %v1888_v13, 1  ;;  %v1801_v45 = vpop.f32.mrb[45].mxu0  ;;  %v1890_v41 = vpop.f32.mrb[69].mxu1  ;;  %v2139_v13 = vld [vmem:[%s5543_s7 + $0xe8] sm:$0xff] }
 0x2f9   : > { %v3565_v41 = vpack.c.bf16 %v2124_v30, %v2116_v32  ;;  %v2202_v32 = vld [vmem:[%s5543_s7 + $0x2e0] sm:$0xff] }
 0x2fa   : > { %v2004_v49 = vsel %vm1330_vm4, %v2002_v33, %v2003_v40  ;;  %v2133_v33 = vld [vmem:[%s5543_s7 + $0xb8] sm:$0xff] }
 0x2fb   : > { %v2024_v52 = vadd.f32 %v2004_v49, %v1793_v39  ;;  %v2122_v39 = vld [vmem:[%s5543_s7 + $0x60] sm:$0xff] }
 0x2fc   : > { %v3501_v45 = vpack.c.bf16 %v2122_v39, %v2114_v38  ;;  %v2130_v49 = vld [vmem:[%s5543_s7 + $0xa0] sm:$0xff] }
 0x2fd   : > { %v2194_v39 = vld [vmem:[%s5543_s7 + $0x2a0] sm:$0xff] }
 0x307   : > { %v1805_v15 = vpop.f32.mrb[46].mxu0  ;;  %v1894_v53 = vpop.f32.mrb[70].mxu1 }
 0x308   : > { %v2008_v58 = vrot.slane %v1894_v53, 1  ;;  %v1807_v59 = vpop.f32.mrb[47].mxu0  ;;  %v1896_v27 = vpop.f32.mrb[71].mxu1  ;;  %v2132_v53 = vld [vmem:[%s5543_s7 + $0xb0] sm:$0xff] }
 0x309   : > { %v2010_v0 = vrot.slane %v1896_v27, 1  ;;  %v3503_v27 = vpack.c.bf16 %v2139_v13, %v2131_v37  ;;  %v2196_v37 = vld [vmem:[%s5543_s7 + $0x2b0] sm:$0xff]  ;;  %v2211_v13 = vld [vmem:[%s5543_s7 + $0x328] sm:$0xff] }
 0x30a   : > { %v2009_v60 = vsel %vm1330_vm4, %v2003_v40, %v2008_v58  ;;  %v2141_v40 = vld [vmem:[%s5543_s7 + $0xf8] sm:$0xff]  ;;  %v2140_v58 = vld [vmem:[%s5543_s7 + $0xf0] sm:$0xff] }
 0x30b   : > { %v2026_v42 = vadd.f32 %v2009_v60, %v1799_v14  ;;  %v3567_v60 = vpack.c.bf16 %v2141_v40, %v2133_v33  ;;  %v2219_v33 = vld [vmem:[%s5543_s7 + $0x368] sm:$0xff]  ;;  %v2213_v40 = vld [vmem:[%s5543_s7 + $0x338] sm:$0xff] }
 0x317   : > { %v1811_v61 = vpop.f32.mrb[48].mxu0  ;;  %v1900_v62 = vpop.f32.mrb[72].mxu1 }
 0x318   : > { %v1813_v48 = vpop.f32.mrb[49].mxu0  ;;  %v1902_v55 = vpop.f32.mrb[73].mxu1  ;;  %v2149_v61 = vld [vmem:[%s5543_s7 + $0x138] sm:$0xff] }
 0x319   : > { %v2014_v56 = vrot.slane %v1902_v55, 1  ;;  %v2157_v62 = vld [vmem:[%s5543_s7 + $0x178] sm:$0xff]  ;;  %v3569_v55 = vpack.c.bf16 %v2140_v58, %v2132_v53  ;;  %v3523_v53 = vpack.c.bf16 %v2219_v33, %v2211_v13  ;;  %v2291_v13 = vld [vmem:[%s5543_s7 + $0x5a8] sm:$0xff] }
 0x31a   : > { %v2299_v33 = vld [vmem:[%s5543_s7 + $0x5e8] sm:$0xff] }
 0x31b   : > { %v2015_v63 = vsel %vm1330_vm4, %v2010_v0, %v2014_v56  ;;  %v2031_v2 = vadd.f32 %v2014_v56, %v1813_v48  ;;  %v1971_v8 = vpop.f32.mrb[50].mxu0  ;;  %v2146_v0 = vld [vmem:[%s5543_s7 + $0x120] sm:$0xff] }
 0x31c   : > { %v2029_v6 = vadd.f32 %v2015_v63, %v1807_v59  ;;  %v1973_v18 = vpop.f32.mrb[51].mxu0  ;;  %v2040_v16 = vrot.slane %v1971_v8, 2  ;;  %v2147_v59 = vld [vmem:[%s5543_s7 + $0x128] sm:$0xff]  ;;  %v2154_v56 = vld [vmem:[%s5543_s7 + $0x160] sm:$0xff]  ;;  %v2148_v8 = vld [vmem:[%s5543_s7 + $0x130] sm:$0xff] }
 0x31d   : > { %v2163_v18 = vld [vmem:[%s5543_s7 + $0x1a8] sm:$0xff] }
 0x31f   : > { %v1977_v10 = vpop.f32.mrb[52].mxu0 }
 0x320   : > { %v2041_v22 = vrot.slane %v1977_v10, 2  ;;  %v1979_v50 = vpop.f32.mrb[53].mxu0  ;;  %v2171_v10 = vld [vmem:[%s5543_s7 + $0x1e8] sm:$0xff] }
 0x321   : > { %v3509_v50 = vpack.c.bf16 %v2154_v56, %v2146_v0  ;;  %v2226_v0 = vld [vmem:[%s5543_s7 + $0x3a0] sm:$0xff] }
 0x322   : > { %v2042_v4 = vsel %vm1453_vm3, %v2040_v16, %v2041_v22  ;;  %v2165_v16 = vld [vmem:[%s5543_s7 + $0x1b8] sm:$0xff]  ;;  %v2234_v56 = vld [vmem:[%s5543_s7 + $0x3e0] sm:$0xff] }
 0x323   : > { %v2062_v9 = vadd.f32 %v2042_v4, %v2024_v52  ;;  %v1983_v57 = vpop.f32.mrb[54].mxu0  ;;  %v2138_v52 = vld [vmem:[%s5543_s7 + $0xe0] sm:$0xff] }
 0x324   : > { %v2046_v20 = vrot.slane %v1983_v57, 2  ;;  %v1985_v3 = vpop.f32.mrb[55].mxu0  ;;  %v3505_v48 = vpack.c.bf16 %v2138_v52, %v2130_v49  ;;  %v2162_v4 = vld [vmem:[%s5543_s7 + $0x1a0] sm:$0xff]  ;;  %v3511_v57 = vpack.c.bf16 %v2171_v10, %v2163_v18  ;;  %v2243_v18 = vld [vmem:[%s5543_s7 + $0x428] sm:$0xff] }
 0x325   : > { %v2082_v7 = vadd.f32 %v2075_v46, %v2062_v9  ;;  %v2048_v36 = vrot.slane %v1985_v3, 2  ;;  %v2170_v9 = vld [vmem:[%s5543_s7 + $0x1e0] sm:$0xff]  ;;  %v2172_v3 = vld [vmem:[%s5543_s7 + $0x1f0] sm:$0xff]  ;;  %v2251_v10 = vld [vmem:[%s5543_s7 + $0x468] sm:$0xff] }
 0x326   : > { %v2047_v21 = vsel %vm1453_vm3, %v2041_v22, %v2046_v20  ;;  %v2173_v22 = vld [vmem:[%s5543_s7 + $0x1f8] sm:$0xff]  ;;  %v2164_v20 = vld [vmem:[%s5543_s7 + $0x1b0] sm:$0xff]  ;;  %v2210_v52 = vld [vmem:[%s5543_s7 + $0x320] sm:$0xff] }
 0x327   : > { %v2064_v24 = vadd.f32 %v2047_v21, %v2026_v42  ;;  %v1989_v23 = vpop.f32.mrb[56].mxu0  ;;  %v2090_v44 = vmax.f32 %v2082_v7, 0.0  ;;  %v2155_v42 = vld [vmem:[%s5543_s7 + $0x168] sm:$0xff]  ;;  %v2189_v7 = vld [vmem:[%s5543_s7 + $0x278] sm:$0xff] }
 0x328   : > { %v1991_v25 = vpop.f32.mrb[57].mxu0  ;;  %v3507_v63 = vpack.c.bf16 %v2155_v42, %v2147_v59  ;;  %v2179_v21 = vld [vmem:[%s5543_s7 + $0x228] sm:$0xff]  ;;  %v2181_v23 = vld [vmem:[%s5543_s7 + $0x238] sm:$0xff]  ;;  %v2212_v59 = vld [vmem:[%s5543_s7 + $0x330] sm:$0xff] }
 0x329   : > { %v2052_v17 = vrot.slane %v1991_v25, 2  ;;  %v2084_v11 = vadd.f32 %v2075_v46, %v2064_v24  ;;  %v3575_v46 = vpack.c.bf16 %v2173_v22, %v2165_v16  ;;  %v2187_v24 = vld [vmem:[%s5543_s7 + $0x268] sm:$0xff]  ;;  %v3513_v25 = vpack.c.bf16 %v2170_v9, %v2162_v4  ;;  %v2245_v16 = vld [vmem:[%s5543_s7 + $0x438] sm:$0xff]  ;;  %v2242_v4 = vld [vmem:[%s5543_s7 + $0x420] sm:$0xff] }
 0x32a   : > { %v3579_v31 = vpack.c.bf16 %v2189_v7, %v2181_v23  ;;  %v2235_v42 = vld [vmem:[%s5543_s7 + $0x3e8] sm:$0xff]  ;;  %v2253_v22 = vld [vmem:[%s5543_s7 + $0x478] sm:$0xff]  ;;  %v2250_v9 = vld [vmem:[%s5543_s7 + $0x460] sm:$0xff] }
 0x32b   : > { %v2053_v26 = vsel %vm1453_vm3, %v2048_v36, %v2052_v17  ;;  %v2069_v29 = vadd.f32 %v2052_v17, %v2031_v2  ;;  %v2092_v34 = vmax.f32 %v2084_v11, 0.0  ;;  %v3571_v2 = vpack.c.bf16 %v2157_v62, %v2149_v61  ;;  %v2178_v17 = vld [vmem:[%s5543_s7 + $0x220] sm:$0xff]  ;;  %v2229_v61 = vld [vmem:[%s5543_s7 + $0x3b8] sm:$0xff] }
 0x32c   : > { %v2067_v35 = vadd.f32 %v2053_v26, %v2029_v6  ;;  %v2156_v6 = vld [vmem:[%s5543_s7 + $0x170] sm:$0xff]  ;;  %v3577_v36 = vpack.c.bf16 %v2172_v3, %v2164_v20  ;;  %v3515_v11 = vpack.c.bf16 %v2187_v24, %v2179_v21  ;;  %v2237_v62 = vld [vmem:[%s5543_s7 + $0x3f8] sm:$0xff]  ;;  %v2259_v21 = vld [vmem:[%s5543_s7 + $0x4a8] sm:$0xff] }
 0x32d   : > { %v2089_v1 = vadd.f32 %v2079_v5, %v2069_v29  ;;  %v5110_v54 = vsel %vm792_vm1, %v2090_v44, %v2092_v34  ;;  %v3573_v19 = vpack.c.bf16 %v2156_v6, %v2148_v8  ;;  %v2180_v26 = vld [vmem:[%s5543_s7 + $0x230] sm:$0xff]  ;;  %v2195_v44 = vld [vmem:[%s5543_s7 + $0x2a8] sm:$0xff]  ;;  %v2261_v23 = vld [vmem:[%s5543_s7 + $0x4b8] sm:$0xff] }
 0x32e   : > { %v2087_v28 = vadd.f32 %v2079_v5, %v2067_v35  ;;  %v2186_v5 = vld [vmem:[%s5543_s7 + $0x260] sm:$0xff]  ;;  %v2188_v29 = vld [vmem:[%s5543_s7 + $0x270] sm:$0xff]  ;;  %v2203_v34 = vld [vmem:[%s5543_s7 + $0x2e8] sm:$0xff] }
 0x32f   : > { %v2097_v51 = vmax.f32 %v2089_v1, 0.0  ;;  %v2197_v35 = vld [vmem:[%s5543_s7 + $0x2b8] sm:$0xff]  ;;  %v3517_v38 = vpack.c.bf16 %v2186_v5, %v2178_v17  ;;  %v3519_v30 = vpack.c.bf16 %v2203_v34, %v2195_v44  ;;  %v2228_v8 = vld [vmem:[%s5543_s7 + $0x3b0] sm:$0xff]  ;;  %v2267_v24 = vld [vmem:[%s5543_s7 + $0x4e8] sm:$0xff] }
 0x330   : > { %v2095_v14 = vmax.f32 %v2087_v28, 0.0  ;;  %v2205_v1 = vld [vmem:[%s5543_s7 + $0x2f8] sm:$0xff]  ;;  %v3581_v28 = vpack.c.bf16 %v2188_v29, %v2180_v26  ;;  %v2236_v6 = vld [vmem:[%s5543_s7 + $0x3f0] sm:$0xff]  ;;  %v2258_v17 = vld [vmem:[%s5543_s7 + $0x4a0] sm:$0xff] }
 0x331   : > { %v2244_v20 = vld [vmem:[%s5543_s7 + $0x430] sm:$0xff]  ;;  %v2269_v7 = vld [vmem:[%s5543_s7 + $0x4f8] sm:$0xff]  ;;  %v2266_v5 = vld [vmem:[%s5543_s7 + $0x4e0] sm:$0xff] }
 0x332   : > { %v2105_v15 = vsel %vm2103_vm5, %v2095_v14, %v2097_v51  ;;  %v3583_v51 = vpack.c.bf16 %v2205_v1, %v2197_v35  ;;  %v2204_v14 = vld [vmem:[%s5543_s7 + $0x2f0] sm:$0xff]  ;;  %v2275_v44 = vld [vmem:[%s5543_s7 + $0x528] sm:$0xff]  ;;  %v2277_v35 = vld [vmem:[%s5543_s7 + $0x538] sm:$0xff] }
 0x333   : > { %2430 = vmatprep.mubr.f32.mxu1 %v2105_v15  ;;  %2501 = vmatprep.mubr.f32.mxu0 %v2105_v15  ;;  %v3585_v49 = vpack.c.bf16 %v2204_v14, %v2196_v37  ;;  %v2252_v3 = vld [vmem:[%s5543_s7 + $0x470] sm:$0xff]  ;;  %v2283_v34 = vld [vmem:[%s5543_s7 + $0x568] sm:$0xff]  ;;  %v2285_v1 = vld [vmem:[%s5543_s7 + $0x578] sm:$0xff] }
 0x334   : > { %2431 = vmatmul.mubr.f32.vlgmr.msra.gmra.mrb[74].mxu1 %v5110_v54  ;;  %2502 = vmatmul.mubr.f32.vlgmr.msra.gmra.mrb[58].mxu0 %v5110_v54  ;;  %v2260_v26 = vld [vmem:[%s5543_s7 + $0x4b0] sm:$0xff] }
 0x335   : > { %3502 = vmatpush1.bf16.msra.mxu1 %v3501_v45  ;;  %3566 = vmatpush1.bf16.msra.mxu0 %v3565_v41  ;;  %v2221_v45 = vld [vmem:[%s5543_s7 + $0x378] sm:$0xff]  ;;  %v3521_v41 = vpack.c.bf16 %v2202_v32, %v2194_v39  ;;  %v2268_v29 = vld [vmem:[%s5543_s7 + $0x4f0] sm:$0xff]  ;;  %v2274_v39 = vld [vmem:[%s5543_s7 + $0x520] sm:$0xff] }
 0x336   : > { %2572 = vmatprep.mubr.f32.mxu1 %v2105_v15  ;;  %2643 = vmatprep.mubr.f32.mxu0 %v2105_v15  ;;  %v2218_v15 = vld [vmem:[%s5543_s7 + $0x360] sm:$0xff]  ;;  %v3587_v58 = vpack.c.bf16 %v2221_v45, %v2213_v40  ;;  %v2276_v37 = vld [vmem:[%s5543_s7 + $0x530] sm:$0xff]  ;;  %v2293_v40 = vld [vmem:[%s5543_s7 + $0x5b8] sm:$0xff] }
 0x337   : > { %3504 = vmatprep.subr.bf16.mxu1 %v3503_v27  ;;  %3568 = vmatprep.subr.bf16.mxu0 %v3567_v60  ;;  %v2220_v27 = vld [vmem:[%s5543_s7 + $0x370] sm:$0xff]  ;;  %v2227_v60 = vld [vmem:[%s5543_s7 + $0x3a8] sm:$0xff]  ;;  %v2282_v32 = vld [vmem:[%s5543_s7 + $0x560] sm:$0xff] }
 0x338   : > { %v2284_v14 = vld [vmem:[%s5543_s7 + $0x570] sm:$0xff]  ;;  %v2301_v45 = vld [vmem:[%s5543_s7 + $0x5f8] sm:$0xff] }
 0x339   : > { %3506 = vmatpush1.bf16.msra.mxu1 %v3505_v48  ;;  %3570 = vmatpush1.bf16.msra.mxu0 %v3569_v55  ;;  %v3525_v48 = vpack.c.bf16 %v2218_v15, %v2210_v52  ;;  %v3589_v55 = vpack.c.bf16 %v2220_v27, %v2212_v59  ;;  %v2290_v52 = vld [vmem:[%s5543_s7 + $0x5a0] sm:$0xff]  ;;  %v2292_v59 = vld [vmem:[%s5543_s7 + $0x5b0] sm:$0xff] }
 0x33a   : > { %3508 = vmatprep.subr.bf16.mxu1 %v3507_v63  ;;  %3572 = vmatprep.subr.bf16.mxu0 %v3571_v2  ;;  %v3527_v63 = vpack.c.bf16 %v2235_v42, %v2227_v60  ;;  %v3591_v2 = vpack.c.bf16 %v2237_v62, %v2229_v61  ;;  %v2298_v15 = vld [vmem:[%s5543_s7 + $0x5e0] sm:$0xff]  ;;  %v2300_v27 = vld [vmem:[%s5543_s7 + $0x5f0] sm:$0xff]  ;;  %v2307_v60 = vld [vmem:[%s5543_s7 + $0x628] sm:$0xff] }
 0x33b   : > { %v2315_v42 = vld [vmem:[%s5543_s7 + $0x668] sm:$0xff]  ;;  %v2309_v61 = vld [vmem:[%s5543_s7 + $0x638] sm:$0xff] }
 0x33c   : > { %v2317_v62 = vld [vmem:[%s5543_s7 + $0x678] sm:$0xff] }
 0x33d   : > { %3510 = vmatpush1.bf16.msra.mxu1 %v3509_v50  ;;  %3574 = vmatpush1.bf16.msra.mxu0 %v3573_v19  ;;  %v3529_v50 = vpack.c.bf16 %v2234_v56, %v2226_v0  ;;  %v3593_v19 = vpack.c.bf16 %v2236_v6, %v2228_v8  ;;  %v2306_v0 = vld [vmem:[%s5543_s7 + $0x620] sm:$0xff]  ;;  %v2308_v8 = vld [vmem:[%s5543_s7 + $0x630] sm:$0xff] }
 0x33e   : > { %3512 = vmatprep.subr.bf16.mxu1 %v3511_v57  ;;  %3576 = vmatprep.subr.bf16.mxu0 %v3575_v46  ;;  %v3531_v57 = vpack.c.bf16 %v2251_v10, %v2243_v18  ;;  %v3595_v46 = vpack.c.bf16 %v2253_v22, %v2245_v16  ;;  %v2314_v56 = vld [vmem:[%s5543_s7 + $0x660] sm:$0xff]  ;;  %v2316_v6 = vld [vmem:[%s5543_s7 + $0x670] sm:$0xff]  ;;  %v2323_v18 = vld [vmem:[%s5543_s7 + $0x6a8] sm:$0xff] }
 0x33f   : > { %v2331_v10 = vld [vmem:[%s5543_s7 + $0x6e8] sm:$0xff]  ;;  %v2325_v16 = vld [vmem:[%s5543_s7 + $0x6b8] sm:$0xff] }
 0x340   : > { %v2333_v22 = vld [vmem:[%s5543_s7 + $0x6f8] sm:$0xff] }
 0x341   : > { %3514 = vmatpush1.bf16.msra.mxu1 %v3513_v25  ;;  %3578 = vmatpush1.bf16.msra.mxu0 %v3577_v36  ;;  %v3533_v25 = vpack.c.bf16 %v2250_v9, %v2242_v4  ;;  %v3597_v36 = vpack.c.bf16 %v2252_v3, %v2244_v20  ;;  %v2322_v4 = vld [vmem:[%s5543_s7 + $0x6a0] sm:$0xff]  ;;  %v2324_v20 = vld [vmem:[%s5543_s7 + $0x6b0] sm:$0xff] }
 0x342   : > { %3516 = vmatprep.subr.bf16.mxu1 %v3515_v11  ;;  %3580 = vmatprep.subr.bf16.mxu0 %v3579_v31  ;;  %v3535_v11 = vpack.c.bf16 %v2267_v24, %v2259_v21  ;;  %v3599_v31 = vpack.c.bf16 %v2269_v7, %v2261_v23  ;;  %v2330_v9 = vld [vmem:[%s5543_s7 + $0x6e0] sm:$0xff]  ;;  %v2332_v3 = vld [vmem:[%s5543_s7 + $0x6f0] sm:$0xff]  ;;  %v2339_v21 = vld [vmem:[%s5543_s7 + $0x728] sm:$0xff] }
 0x343   : > { %v2347_v24 = vld [vmem:[%s5543_s7 + $0x768] sm:$0xff]  ;;  %v2341_v23 = vld [vmem:[%s5543_s7 + $0x738] sm:$0xff] }
 0x344   : > { %v2349_v7 = vld [vmem:[%s5543_s7 + $0x778] sm:$0xff] }
 0x345   : > { %3518 = vmatpush1.bf16.msra.mxu1 %v3517_v38  ;;  %3582 = vmatpush1.bf16.msra.mxu0 %v3581_v28  ;;  %v3537_v38 = vpack.c.bf16 %v2266_v5, %v2258_v17  ;;  %v3601_v28 = vpack.c.bf16 %v2268_v29, %v2260_v26  ;;  %v2338_v17 = vld [vmem:[%s5543_s7 + $0x720] sm:$0xff]  ;;  %v2340_v26 = vld [vmem:[%s5543_s7 + $0x730] sm:$0xff] }
 0x346   : > { %3520 = vmatprep.subr.bf16.mxu1 %v3519_v30  ;;  %3584 = vmatprep.subr.bf16.mxu0 %v3583_v51  ;;  %v3539_v30 = vpack.c.bf16 %v2283_v34, %v2275_v44  ;;  %v3603_v51 = vpack.c.bf16 %v2285_v1, %v2277_v35  ;;  %v2346_v5 = vld [vmem:[%s5543_s7 + $0x760] sm:$0xff]  ;;  %v2348_v29 = vld [vmem:[%s5543_s7 + $0x770] sm:$0xff]  ;;  %v2355_v44 = vld [vmem:[%s5543_s7 + $0x7a8] sm:$0xff] }
 0x347   : > { %v2363_v34 = vld [vmem:[%s5543_s7 + $0x7e8] sm:$0xff]  ;;  %v2357_v35 = vld [vmem:[%s5543_s7 + $0x7b8] sm:$0xff] }
 0x348   : > { %v2365_v1 = vld [vmem:[%s5543_s7 + $0x7f8] sm:$0xff] }
 0x349   : > { %3522 = vmatpush1.bf16.msra.mxu1 %v3521_v41  ;;  %3586 = vmatpush1.bf16.msra.mxu0 %v3585_v49  ;;  %v3541_v41 = vpack.c.bf16 %v2282_v32, %v2274_v39  ;;  %v3605_v49 = vpack.c.bf16 %v2284_v14, %v2276_v37  ;;  %v2354_v39 = vld [vmem:[%s5543_s7 + $0x7a0] sm:$0xff]  ;;  %v3559_v32 = vpack.c.bf16 %v2363_v34, %v2355_v44  ;;  %v2356_v37 = vld [vmem:[%s5543_s7 + $0x7b0] sm:$0xff] }
 0x34a   : > { %3524 = vmatprep.subr.bf16.mxu1 %v3523_v53  ;;  %3588 = vmatprep.subr.bf16.mxu0 %v3587_v58  ;;  %v3543_v53 = vpack.c.bf16 %v2299_v33, %v2291_v13  ;;  %v3607_v58 = vpack.c.bf16 %v2301_v45, %v2293_v40  ;;  %v2364_v14 = vld [vmem:[%s5543_s7 + $0x7f0] sm:$0xff]  ;;  %v3651_v40 = vmov 1966171168   ;;  %v2800_v44 = vld [vmem:[%s5547_s11] sm:$0xff] }
 0x34b   : > { %v3625_v33 = vpack.c.bf16 %v2364_v14, %v2356_v37  ;;  %v2655_v45 = vunpack.c.l.s4 %v3651_v40  ;;  %v2809_v37 = vrot.slane %v2800_v44, %v5102_v47 }
 0x34d   : > { %3526 = vmatpush1.bf16.msra.mxu1 %v3525_v48  ;;  %3590 = vmatpush1.bf16.msra.mxu0 %v3589_v55  ;;  %v3545_v48 = vpack.c.bf16 %v2298_v15, %v2290_v52  ;;  %v3609_v55 = vpack.c.bf16 %v2300_v27, %v2292_v59 }
 0x34e   : > { %3528 = vmatprep.subr.bf16.mxu1 %v3527_v63  ;;  %3592 = vmatprep.subr.bf16.mxu0 %v3591_v2  ;;  %v3547_v63 = vpack.c.bf16 %v2315_v42, %v2307_v60  ;;  %v3611_v2 = vpack.c.bf16 %v2317_v62, %v2309_v61 }
 0x351   : > { %3530 = vmatpush1.bf16.msra.mxu1 %v3529_v50  ;;  %3594 = vmatpush1.bf16.msra.mxu0 %v3593_v19  ;;  %v3549_v50 = vpack.c.bf16 %v2314_v56, %v2306_v0  ;;  %v3613_v19 = vpack.c.bf16 %v2316_v6, %v2308_v8 }
 0x352   : > { %3532 = vmatprep.subr.bf16.mxu1 %v3531_v57  ;;  %3596 = vmatprep.subr.bf16.mxu0 %v3595_v46  ;;  %v3551_v57 = vpack.c.bf16 %v2331_v10, %v2323_v18  ;;  %v3615_v46 = vpack.c.bf16 %v2333_v22, %v2325_v16 }
 0x355   : > { %3534 = vmatpush1.bf16.msra.mxu1 %v3533_v25  ;;  %3598 = vmatpush1.bf16.msra.mxu0 %v3597_v36  ;;  %v3553_v25 = vpack.c.bf16 %v2330_v9, %v2322_v4  ;;  %v3617_v36 = vpack.c.bf16 %v2332_v3, %v2324_v20 }
 0x356   : > { %3536 = vmatprep.subr.bf16.mxu1 %v3535_v11  ;;  %3600 = vmatprep.subr.bf16.mxu0 %v3599_v31  ;;  %v3555_v11 = vpack.c.bf16 %v2347_v24, %v2339_v21  ;;  %v3619_v31 = vpack.c.bf16 %v2349_v7, %v2341_v23 }
 0x359   : > { %3538 = vmatpush1.bf16.msra.mxu1 %v3537_v38  ;;  %3602 = vmatpush1.bf16.msra.mxu0 %v3601_v28  ;;  %v3557_v38 = vpack.c.bf16 %v2346_v5, %v2338_v17  ;;  %v3621_v28 = vpack.c.bf16 %v2348_v29, %v2340_v26  ;;  %v2766_v17 = vsub.s32 3, %v5091_v12  ;;  %v2750_v5 = vld [vmem:[%s5546_s10] sm:$0xff]  ;;  %v2778_v26 = vsub.s32 6, %v5091_v12 }
 0x35a   : > { %3540 = vmatprep.subr.bf16.mxu1 %v3539_v30  ;;  %3604 = vmatprep.subr.bf16.mxu0 %v3603_v51  ;;  %v3623_v30 = vpack.c.bf16 %v2365_v1, %v2357_v35  ;;  %v2362_v51 = vld [vmem:[%s5543_s7 + $0x7e0] sm:$0xff]  ;;  %v2782_v29 = vsub.s32 7, %v5091_v12  ;;  %v2755_v34 = vrot.slane %v2750_v5, %v5094_v43  ;;  %v2759_v35 = vrot.slane %v2750_v5, %v5102_v47 }
 0x35b   : > { %v3561_v13 = vpack.c.bf16 %v2362_v51, %v2354_v39  ;;  %v2805_v51 = vrot.slane %v2800_v44, %v5094_v43 }
 0x35d   : > { %3542 = vmatpush1.bf16.msra.mxu1 %v3541_v41  ;;  %3606 = vmatpush1.bf16.msra.mxu0 %v3605_v49  ;;  %v2656_v41 = vunpack.c.0.s8 %v2655_v45  ;;  %v2829_v45 = vrot.slane %v2800_v44, %v2778_v26 }
 0x35e   : > { %3544 = vmatprep.subr.bf16.mxu1 %v3543_v53  ;;  %3608 = vmatprep.subr.bf16.mxu0 %v3607_v58 }
 0x35f   : > { %v5489_v49 = vsub.s32 %v2656_v41, %v5091_v12  ;;  %v2833_v41 = vrot.slane %v2800_v44, %v2782_v29 }
 0x361   : > { %3546 = vmatpush1.bf16.msra.mxu1 %v3545_v48  ;;  %3610 = vmatpush1.bf16.msra.mxu0 %v3609_v55 }
 0x362   : > { %3548 = vmatprep.subr.bf16.mxu1 %v3547_v63  ;;  %3612 = vmatprep.subr.bf16.mxu0 %v3611_v2 }
 0x365   : > { %3550 = vmatpush1.bf16.msra.mxu1 %v3549_v50  ;;  %3614 = vmatpush1.bf16.msra.mxu0 %v3613_v19 }
 0x366   : > { %3552 = vmatprep.subr.bf16.mxu1 %v3551_v57  ;;  %3616 = vmatprep.subr.bf16.mxu0 %v3615_v46  ;;  %v2731_v46 = vld [vmem:[%s5545_s9] sm:$0x3] }
 0x369   : > { %3554 = vmatpush1.bf16.msra.mxu1 %v3553_v25  ;;  %3618 = vmatpush1.bf16.msra.mxu0 %v3617_v36  ;;  %v2762_v36 = vsub.s32 2, %v5091_v12 }
 0x36a   : > { %3556 = vmatprep.subr.bf16.mxu1 %v3555_v11  ;;  %3620 = vmatprep.subr.bf16.mxu0 %v3619_v31  ;;  %v2770_v11 = vsub.s32 4, %v5091_v12  ;;  %v2774_v31 = vsub.s32 5, %v5091_v12  ;;  %v2817_v12 = vrot.slane %v2800_v44, %v2766_v17 }
 0x36b   : > { %v2763_v1 = vrot.slane %v2750_v5, %v2762_v36  ;;  %v2813_v14 = vrot.slane %v2800_v44, %v2762_v36 }
 0x36c   : > { %v2775_v39 = vrot.slane %v2750_v5, %v2774_v31  ;;  %v2825_v40 = vrot.slane %v2800_v44, %v2774_v31 }
 0x36d   : > { %3558 = vmatpush1.bf16.msra.mxu1 %v3557_v38  ;;  %3622 = vmatpush1.bf16.msra.mxu0 %v3621_v28  ;;  %v2767_v38 = vrot.slane %v2750_v5, %v2766_v17  ;;  %v2771_v28 = vrot.slane %v2750_v5, %v2770_v11 }
 0x36e   : > { %3560 = vmatprep.subr.bf16.mxu1 %v3559_v32  ;;  %3624 = vmatprep.subr.bf16.mxu0 %v3623_v30  ;;  %v2779_v32 = vrot.slane %v2750_v5, %v2778_v26  ;;  %v2783_v30 = vrot.slane %v2750_v5, %v2782_v29 }
 0x371   : > { %3562 = vmatpush1.bf16.msra.mxu1 %v3561_v13  ;;  %3626 = vmatpush1.bf16.msra.mxu0 %v3625_v33  ;;  %v2821_v33 = vrot.slane %v2800_v44, %v2770_v11 }
 0x374   : > { %2573 = vmatmul.mubr.f32.vlgmr.msra.gmra.mrb[76].mxu1 %v5110_v54  ;;  %2644 = vmatmul.mubr.f32.vlgmr.msra.gmra.mrb[60].mxu0 %v5110_v54  ;;  %v2650_v54 = vld [vmem:[%s5544_s8] sm:$0x3] }
 0x407   : > { %v2432_v52 = vpop.f32.mrb[74].mxu1  ;;  %v2503_v15 = vpop.f32.mrb[58].mxu0 }
 0x408   : > { %v2434_v53 = vpop.f32.mrb[75].mxu1  ;;  %v2505_v58 = vpop.f32.mrb[59].mxu0 }
 0x409   : > { %v2653_v59 = vcombine.low %v2432_v52, %v2434_v53  ;;  %v2672_v27 = vcombine.low %v2503_v15, %v2505_v58 }
 0x40b   : > { %v2660_v60 = vrot.slane %v2653_v59, %v5489_v49  ;;  %v2679_v42 = vrot.slane %v2672_v27, %v5489_v49 }
 0x40d   : > { %v2667_v61 = vrot.slane %v2660_v60, %v5489_v49  ;;  %v2680_v62 = vcombine.high %v2679_v42, %v2679_v42 }
 0x40f   : > { %v2669_v48 = vadd.f32 %v2667_v61, %v2650_v54  ;;  %v2687_v55 = vrot.slane %v2680_v62, %v5489_v49 }
 0x411   : > { %v2689_v0 = vadd.f32 %v2687_v55, %v2669_v48 }
 0x447   : > { %v2574_v56 = vpop.f32.mrb[76].mxu1  ;;  %v2645_v63 = vpop.f32.mrb[60].mxu0 }
 0x448   : > { %v2576_v2 = vpop.f32.mrb[77].mxu1  ;;  %v2647_v8 = vpop.f32.mrb[61].mxu0 }
 0x449   : > { %v2692_v6 = vcombine.low %v2574_v56, %v2576_v2  ;;  %v2712_v18 = vcombine.low %v2645_v63, %v2647_v8 }
 0x44b   : > { %v2699_v10 = vrot.slane %v2692_v6, %v5489_v49  ;;  %v2719_v16 = vrot.slane %v2712_v18, %v5489_v49 }
 0x44d   : > { %v2706_v22 = vrot.slane %v2699_v10, %v5489_v49  ;;  %v2720_v50 = vcombine.high %v2719_v16, %v2719_v16 }
 0x44f   : > { %v2707_v19 = vcombine.high %v2706_v22, %v2706_v22  ;;  %v2727_v4 = vrot.slane %v2720_v50, %v5489_v49 }
 0x451   : > { %v2709_v9 = vadd.f32 %v2707_v19, %v2689_v0  ;;  %v2728_v57 = vcombine.high %v2727_v4, %v2727_v4 }
 0x453   : > { %v2730_v20 = vadd.f32 %v2728_v57, %v2709_v9 }
 0x455   : > { %v2732_v3 = vmul.f32 %v2731_v46, %v2730_v20 }
 0x457   : > { %v2737_v21 = vrot.slane %v2732_v3, %v5094_v43  ;;  %v2741_v24 = vrot.slane %v2732_v3, %v5102_v47 }
 0x459   : > { %v2745_v23 = vsel %vm2744_vm6, %v2737_v21, 0.0  ;;  %v2746_v7 = vsel %vm2744_vm6, %v2741_v24, 0.0 }
 0x45a   : > { %v2747_v25 = vadd.f32 %v2746_v7, %v2745_v23 }
 0x45c   : > { %2748 = vadd.xlane.f32.xlu0 %v2747_v25 }
 0x4e9   : > { %v2749_v13 = vpop.xlane.xlu0 %2748 }
 0x4ea   : > { %v2792_v52 = vmul.f32 %v2755_v34, %v2749_v13  ;;  %v2793_v15 = vmul.f32 %v2759_v35, %v2749_v13  ;;  %v2794_v53 = vmul.f32 %v2763_v1, %v2749_v13  ;;  %v2795_v58 = vmul.f32 %v2767_v38, %v2749_v13 }
 0x4eb   : > { %v2796_v59 = vmul.f32 %v2771_v28, %v2749_v13  ;;  %v2797_v27 = vmul.f32 %v2775_v39, %v2749_v13  ;;  %v2798_v60 = vmul.f32 %v2779_v32, %v2749_v13  ;;  %v2799_v42 = vmul.f32 %v2783_v30, %v2749_v13 }
 0x4ec   : > { %v2842_v54 = vadd.f32 %v2805_v51, %v2792_v52  ;;  %v2843_v61 = vadd.f32 %v2809_v37, %v2793_v15  ;;  %v2844_v43 = vadd.f32 %v2813_v14, %v2794_v53  ;;  %v2845_v47 = vadd.f32 %v2817_v12, %v2795_v58 }
 0x4ed   : > { %v2846_v62 = vadd.f32 %v2821_v33, %v2796_v59  ;;  %v2847_v48 = vadd.f32 %v2825_v40, %v2797_v27  ;;  %v2848_v55 = vadd.f32 %v2829_v45, %v2798_v60  ;;  %v2849_v0 = vadd.f32 %v2833_v41, %v2799_v42 }
 0x4ee   : > { %v2858_v56 = vcombine.low %v2842_v54, %v2843_v61  ;;  %v2859_v63 = vcombine.low %v2844_v43, %v2845_v47 }
 0x4ef   : > { %v2860_v2 = vcombine.low %v2846_v62, %v2847_v48  ;;  %v2861_v8 = vcombine.low %v2848_v55, %v2849_v0 }
 0x4f0   : > { %v2868_v6 = vrot.slane %v2858_v56, %v5489_v49  ;;  %v2875_v18 = vrot.slane %v2859_v63, %v5489_v49 }
 0x4f1   : > { %v2882_v10 = vrot.slane %v2860_v2, %v5489_v49  ;;  %v2889_v16 = vrot.slane %v2861_v8, %v5489_v49 }
 0x4f2   : > { %v2890_v22 = vcombine.low %v2868_v6, %v2875_v18 }
 0x4f3   : > { %v2891_v50 = vcombine.low %v2882_v10, %v2889_v16 }
 0x4f4   : > { %v2898_v19 = vrot.slane %v2890_v22, %v5489_v49 }
 0x4f5   : > { %v2905_v4 = vrot.slane %v2891_v50, %v5489_v49 }
 0x4f7   : > { %v2906_v9 = vcombine.low %v2898_v19, %v2905_v4 }
 0x4f9   : > { %2908 = vst [vmem:[%s411_s20] sm:$0xff] %v2906_v9 }
 0x4fa PF: > { %s22_s21 = sadd.s32 1, %s3648_s21  }
 0x4fb   : > { %p19_p4 = scmp.ge.s32.totalorder %s22_s21, 4  }
 0x4fd   :  { %21 = sbr.rel (!%p19_p4) target bundleno = 1 (0x1), region = 109 }

</bundles_post_ra>
